<compile_context>
chip_gen: v7x
topology: tpu7x:2x2x1
jax: 0.10.0
libtpu: 0.0.40
codegen_flags: <defaults>
</compile_context>

<pallas_src>
import math
from functools import partial

import jax
import jax.numpy as jnp
from jax.experimental import pallas as pl
from jax.experimental.pallas import tpu as pltpu

# ----------------------------- model config -----------------------------
BATCH = 2
SEQ = 8
INPUT_DIM = 32          # == embed_dim (required by the residual connections)
EMBED_DIM = 32
NUM_HEADS = 4
HEAD_DIM = EMBED_DIM // NUM_HEADS
DIM_FF = 64
NUM_LAYERS = 2
LN_EPS = 1e-5


def _layer_norm(x, gamma, beta):
    mean = jnp.mean(x, axis=-1, keepdims=True)
    var = jnp.mean(jnp.square(x - mean), axis=-1, keepdims=True)
    return (x - mean) * jax.lax.rsqrt(var + LN_EPS) * gamma + beta


# ----------------------------- fused encoder kernel -----------------------------
def encoder_kernel(x_ref, wqkv_ref, bqkv_ref, wo_ref, bo_ref,
                   g1_ref, be1_ref, w1_ref, b1_ref, w2_ref, b2_ref,
                   g2_ref, be2_ref, o_ref,
                   *, num_layers, num_heads, head_dim, embed_dim):
    H, hd, E = num_heads, head_dim, embed_dim
    h = x_ref[0]                                    # (S, D) activation for this batch element

    for l in range(num_layers):                     # static unroll: one basic block for the stack
        x = h

        # ---- MultiheadAttention: fused QKV projection (1/sqrt(hd) pre-folded into Q cols) ----
        qkv = jnp.dot(x, wqkv_ref[l], preferred_element_type=jnp.float32) + bqkv_ref[l]  # (S, 3E)
        # per-head views via static lane slices (column layout: [Q head-major | K | V])
        q = jnp.stack([qkv[:, i * hd:(i + 1) * hd] for i in range(H)], axis=0)            # (H,S,hd)
        k = jnp.stack([qkv[:, E + i * hd:E + (i + 1) * hd] for i in range(H)], axis=0)    # (H,S,hd)
        v = jnp.stack([qkv[:, 2 * E + i * hd:2 * E + (i + 1) * hd] for i in range(H)], axis=0)

        logits = jnp.einsum("hqd,hkd->hqk", q, k,
                            preferred_element_type=jnp.float32)                           # (H,S,S)
        logits = logits - jnp.max(logits, axis=-1, keepdims=True)
        p = jnp.exp(logits)
        attn = p * pl.reciprocal(jnp.sum(p, axis=-1, keepdims=True), approx=False)
        ctx = jnp.einsum("hqk,hkd->hqd", attn, v,
                         preferred_element_type=jnp.float32)                              # (H,S,hd)

        # head-concatenated context -> single lane-dense output projection
        ctx2 = jnp.concatenate([ctx[i] for i in range(H)], axis=-1)                       # (S, E)
        attn_out = jnp.dot(ctx2, wo_ref[l], preferred_element_type=jnp.float32) + bo_ref[l]

        # ---- residual + LayerNorm 1 ----
        h1 = _layer_norm(x + attn_out, g1_ref[l], be1_ref[l])

        # ---- FFN: Linear -> ReLU -> Linear (dropout p=0 omitted) ----
        ff = jnp.dot(h1, w1_ref[l], preferred_element_type=jnp.float32) + b1_ref[l]
        ff = jnp.maximum(ff, 0.0)
        ff = jnp.dot(ff, w2_ref[l], preferred_element_type=jnp.float32) + b2_ref[l]

        # ---- residual + LayerNorm 2 ----
        h = _layer_norm(h1 + ff, g2_ref[l], be2_ref[l])

    o_ref[0] = h


# ----------------------------- wrapper: weight packing + pallas_call -----------------------------
_WEIGHT_ORDER = ("wqkv", "bqkv", "wo", "bo", "g1", "be1",
                 "w1", "b1", "w2", "b2", "g2", "be2")


def pack_layer(p):
    """Re-pack one layer's PyTorch-layout params into kernel layout.

    Wqkv is a single (D, 3E) matrix with column layout [Q (head-major) | K | V];
    the 1/sqrt(head_dim) attention scale is folded into the Q columns / Q bias.
    All matmul weights are pre-transposed so the kernel does `x @ W` directly.
    """
    H, hd, D, E = NUM_HEADS, HEAD_DIM, INPUT_DIM, EMBED_DIM
    scale = 1.0 / math.sqrt(hd)
    # qkv_proj rows are head-interleaved [q_h | k_h | v_h] per the module's reshape semantics.
    w4 = p["w_qkv"].reshape(H, 3, hd, D)           # (head, {q,k,v}, hd, D)
    b4 = p["b_qkv"].reshape(H, 3, hd)
    wq = (w4[:, 0] * scale).reshape(E, D)          # (E, D) head-major rows, scale folded in
    wk = w4[:, 1].reshape(E, D)
    wv = w4[:, 2].reshape(E, D)
    wqkv = jnp.concatenate([wq, wk, wv], axis=0).T                 # (D, 3E)
    bq = (b4[:, 0] * scale).reshape(E)
    bk = b4[:, 1].reshape(E)
    bv = b4[:, 2].reshape(E)
    bqkv = jnp.concatenate([bq, bk, bv])[None, :]                  # (1, 3E)
    return {
        "wqkv": wqkv, "bqkv": bqkv,
        "wo": p["w_o"].T, "bo": p["b_o"][None, :],
        "g1": p["g1"][None, :], "be1": p["be1"][None, :],
        "w1": p["w1"].T, "b1": p["b1"][None, :],
        "w2": p["w2"].T, "b2": p["b2"][None, :],
        "g2": p["g2"][None, :], "be2": p["be2"][None, :],
    }


def stack_layers(layer_params):
    packed = [pack_layer(p) for p in layer_params]
    return [jnp.stack([pk[name] for pk in packed], axis=0) for name in _WEIGHT_ORDER]


def transformer_encoder(x, layer_params):
    B, S, D = x.shape
    L = len(layer_params)
    weights = stack_layers(layer_params)            # each (L, ...) and rank-3

    # activation: one (S, D) block per batch element; weights: full arrays, resident in VMEM
    in_specs = [pl.BlockSpec((1, S, D), lambda b: (b, 0, 0))]
    in_specs += [pl.BlockSpec(w.shape, lambda b: (0, 0, 0)) for w in weights]

    kernel = partial(encoder_kernel, num_layers=L, num_heads=NUM_HEADS,
                     head_dim=HEAD_DIM, embed_dim=EMBED_DIM)
    out = pl.pallas_call(
        kernel,
        out_shape=jax.ShapeDtypeStruct((B, S, D), jnp.float32),
        grid_spec=pltpu.PrefetchScalarGridSpec(
            num_scalar_prefetch=0,
            grid=(B,),
            in_specs=in_specs,
            out_specs=pl.BlockSpec((1, S, D), lambda b: (b, 0, 0)),
        ),
        compiler_params=pltpu.CompilerParams(
            dimension_semantics=("parallel",)),      # batches independent -> both TCs on v7x
    )(x, *weights)
    return out


# ----------------------------- parameter init (PyTorch layout) -----------------------------
def xavier_uniform(key, shape):
    fan_out, fan_in = shape
    limit = math.sqrt(6.0 / (fan_in + fan_out))
    return jax.random.uniform(key, shape, jnp.float32, -limit, limit)


def linear_uniform(key, shape, fan_in):
    limit = 1.0 / math.sqrt(fan_in)
    return jax.random.uniform(key, shape, jnp.float32, -limit, limit)


def init_layer_params(key):
    ks = jax.random.split(key, 6)
    return {
        "w_qkv": xavier_uniform(ks[0], (3 * EMBED_DIM, INPUT_DIM)),
        "b_qkv": jnp.zeros((3 * EMBED_DIM,), jnp.float32),
        "w_o": xavier_uniform(ks[1], (EMBED_DIM, EMBED_DIM)),
        "b_o": jnp.zeros((EMBED_DIM,), jnp.float32),
        "g1": jnp.ones((INPUT_DIM,), jnp.float32),
        "be1": jnp.zeros((INPUT_DIM,), jnp.float32),
        "w1": linear_uniform(ks[2], (DIM_FF, INPUT_DIM), INPUT_DIM),
        "b1": linear_uniform(ks[3], (DIM_FF,), INPUT_DIM),
        "w2": linear_uniform(ks[4], (INPUT_DIM, DIM_FF), DIM_FF),
        "b2": linear_uniform(ks[5], (INPUT_DIM,), DIM_FF),
        "g2": jnp.ones((INPUT_DIM,), jnp.float32),
        "be2": jnp.zeros((INPUT_DIM,), jnp.float32),
    }


# ----------------------------- pure-JAX reference (mirrors the PyTorch module) -----------------------------
def reference_block(x, p):
    B, S, D = x.shape
    H, hd = NUM_HEADS, HEAD_DIM
    qkv = x @ p["w_qkv"].T + p["b_qkv"]                       # (B, S, 3E)
    qkv = qkv.reshape(B, S, H, 3 * hd).transpose(0, 2, 1, 3)
    q, k, v = jnp.split(qkv, 3, axis=-1)
    logits = jnp.einsum("bhqd,bhkd->bhqk", q, k) / math.sqrt(hd)
    attn = jax.nn.softmax(logits, axis=-1)
    vals = jnp.einsum("bhqk,bhkd->bhqd", attn, v).transpose(0, 2, 1, 3).reshape(B, S, EMBED_DIM)
    o = vals @ p["w_o"].T + p["b_o"]
    h1 = _layer_norm(x + o, p["g1"], p["be1"])
    ff = jnp.maximum(h1 @ p["w1"].T + p["b1"], 0.0)
    ff = ff @ p["w2"].T + p["b2"]
    return _layer_norm(h1 + ff, p["g2"], p["be2"])


def reference_encoder(x, layer_params):
    for p in layer_params:
        x = reference_block(x, p)
    return x


if __name__ == "__main__":
    key = jax.random.PRNGKey(0)
    kx, *kl = jax.random.split(key, NUM_LAYERS + 1)
    x = jax.random.normal(kx, (BATCH, SEQ, INPUT_DIM), jnp.float32)
    layer_params = [init_layer_params(k) for k in kl]

    out = transformer_encoder(x, layer_params)
    out = jax.block_until_ready(out)

    ref = reference_encoder(x, layer_params)
    assert out.shape == (BATCH, SEQ, INPUT_DIM)
    assert jnp.allclose(out, ref, atol=1e-4, rtol=1e-4), "Pallas output mismatch vs JAX reference"

    print("KERNEL_OK")
</pallas_src>

<mosaic_0001>
module attributes {stable_mosaic.version = 11 : i64} {
  func.func @encoder_kernel(%arg0: i32, %arg1: memref<1x8x32xf32, #tpu.memory_space<vmem>>, %arg2: memref<2x32x96xf32, #tpu.memory_space<vmem>>, %arg3: memref<2x1x96xf32, #tpu.memory_space<vmem>>, %arg4: memref<2x32x32xf32, #tpu.memory_space<vmem>>, %arg5: memref<2x1x32xf32, #tpu.memory_space<vmem>>, %arg6: memref<2x1x32xf32, #tpu.memory_space<vmem>>, %arg7: memref<2x1x32xf32, #tpu.memory_space<vmem>>, %arg8: memref<2x32x64xf32, #tpu.memory_space<vmem>>, %arg9: memref<2x1x64xf32, #tpu.memory_space<vmem>>, %arg10: memref<2x64x32xf32, #tpu.memory_space<vmem>>, %arg11: memref<2x1x32xf32, #tpu.memory_space<vmem>>, %arg12: memref<2x1x32xf32, #tpu.memory_space<vmem>>, %arg13: memref<2x1x32xf32, #tpu.memory_space<vmem>>, %arg14: memref<1x8x32xf32, #tpu.memory_space<vmem>>) attributes {dimension_semantics = [#tpu.dimension_semantics<parallel>], iteration_bounds = array<i64: 2>, scalar_prefetch = 0 : i64, scratch_operands = 0 : i64, tpu.core_type = #tpu.core_type<tc>, window_params = [{transform_indices = @transform_0, window_bounds = array<i64: 1, 8, 32>}, {pipeline_mode = #tpu.pipeline_mode<synchronous>, transform_indices = @transform_1, window_bounds = array<i64: 2, 32, 96>}, {pipeline_mode = #tpu.pipeline_mode<synchronous>, transform_indices = @transform_2, window_bounds = array<i64: 2, 1, 96>}, {pipeline_mode = #tpu.pipeline_mode<synchronous>, transform_indices = @transform_3, window_bounds = array<i64: 2, 32, 32>}, {pipeline_mode = #tpu.pipeline_mode<synchronous>, transform_indices = @transform_4, window_bounds = array<i64: 2, 1, 32>}, {pipeline_mode = #tpu.pipeline_mode<synchronous>, transform_indices = @transform_5, window_bounds = array<i64: 2, 1, 32>}, {pipeline_mode = #tpu.pipeline_mode<synchronous>, transform_indices = @transform_6, window_bounds = array<i64: 2, 1, 32>}, {pipeline_mode = #tpu.pipeline_mode<synchronous>, transform_indices = @transform_7, window_bounds = array<i64: 2, 32, 64>}, {pipeline_mode = #tpu.pipeline_mode<synchronous>, transform_indices = @transform_8, window_bounds = array<i64: 2, 1, 64>}, {pipeline_mode = #tpu.pipeline_mode<synchronous>, transform_indices = @transform_9, window_bounds = array<i64: 2, 64, 32>}, {pipeline_mode = #tpu.pipeline_mode<synchronous>, transform_indices = @transform_10, window_bounds = array<i64: 2, 1, 32>}, {pipeline_mode = #tpu.pipeline_mode<synchronous>, transform_indices = @transform_11, window_bounds = array<i64: 2, 1, 32>}, {pipeline_mode = #tpu.pipeline_mode<synchronous>, transform_indices = @transform_12, window_bounds = array<i64: 2, 1, 32>}, {transform_indices = @transform_13, window_bounds = array<i64: 1, 8, 32>}]} {
    %c0 = arith.constant 0 : index
    %c0_0 = arith.constant 0 : index
    %c0_1 = arith.constant 0 : index
    %0 = vector.load %arg1[%c0, %c0_0, %c0_1] : memref<1x8x32xf32, #tpu.memory_space<vmem>>, vector<1x8x32xf32>
    %1 = vector.shape_cast %0 : vector<1x8x32xf32> to vector<8x32xf32>
    %c0_2 = arith.constant 0 : index
    %c0_3 = arith.constant 0 : index
    %c0_4 = arith.constant 0 : index
    %2 = vector.load %arg2[%c0_2, %c0_3, %c0_4] : memref<2x32x96xf32, #tpu.memory_space<vmem>>, vector<1x32x96xf32>
    %3 = vector.shape_cast %2 : vector<1x32x96xf32> to vector<32x96xf32>
    %cst = arith.constant dense<0.000000e+00> : vector<8x96xf32>
    %4 = tpu.matmul %1, %3, %cst {dimension_numbers = #tpu.dot_dimension_numbers<[1], [0], [0], [1], [0, 0, 1, 1], [], []>} : vector<8x32xf32>, vector<32x96xf32>, vector<8x96xf32> -> vector<8x96xf32>
    %c0_5 = arith.constant 0 : index
    %c0_6 = arith.constant 0 : index
    %c0_7 = arith.constant 0 : index
    %5 = vector.load %arg3[%c0_5, %c0_6, %c0_7] : memref<2x1x96xf32, #tpu.memory_space<vmem>>, vector<1x1x96xf32>
    %6 = vector.shape_cast %5 : vector<1x1x96xf32> to vector<1x96xf32>
    %7 = vector.broadcast %6 : vector<1x96xf32> to vector<8x96xf32>
    %8 = arith.addf %4, %7 : vector<8x96xf32>
    %9 = vector.extract_strided_slice %8 {offsets = [0, 0], sizes = [8, 8], strides = [1, 1]} : vector<8x96xf32> to vector<8x8xf32>
    %10 = vector.extract_strided_slice %8 {offsets = [0, 8], sizes = [8, 8], strides = [1, 1]} : vector<8x96xf32> to vector<8x8xf32>
    %11 = vector.extract_strided_slice %8 {offsets = [0, 16], sizes = [8, 8], strides = [1, 1]} : vector<8x96xf32> to vector<8x8xf32>
    %12 = vector.extract_strided_slice %8 {offsets = [0, 24], sizes = [8, 8], strides = [1, 1]} : vector<8x96xf32> to vector<8x8xf32>
    %13 = vector.shape_cast %9 : vector<8x8xf32> to vector<1x8x8xf32>
    %14 = vector.shape_cast %10 : vector<8x8xf32> to vector<1x8x8xf32>
    %15 = vector.shape_cast %11 : vector<8x8xf32> to vector<1x8x8xf32>
    %16 = vector.shape_cast %12 : vector<8x8xf32> to vector<1x8x8xf32>
    %17 = tpu.concatenate %13, %14, %15, %16 in 0 : vector<1x8x8xf32>, vector<1x8x8xf32>, vector<1x8x8xf32>, vector<1x8x8xf32> -> vector<4x8x8xf32>
    %18 = vector.extract_strided_slice %8 {offsets = [0, 32], sizes = [8, 8], strides = [1, 1]} : vector<8x96xf32> to vector<8x8xf32>
    %19 = vector.extract_strided_slice %8 {offsets = [0, 40], sizes = [8, 8], strides = [1, 1]} : vector<8x96xf32> to vector<8x8xf32>
    %20 = vector.extract_strided_slice %8 {offsets = [0, 48], sizes = [8, 8], strides = [1, 1]} : vector<8x96xf32> to vector<8x8xf32>
    %21 = vector.extract_strided_slice %8 {offsets = [0, 56], sizes = [8, 8], strides = [1, 1]} : vector<8x96xf32> to vector<8x8xf32>
    %22 = vector.shape_cast %18 : vector<8x8xf32> to vector<1x8x8xf32>
    %23 = vector.shape_cast %19 : vector<8x8xf32> to vector<1x8x8xf32>
    %24 = vector.shape_cast %20 : vector<8x8xf32> to vector<1x8x8xf32>
    %25 = vector.shape_cast %21 : vector<8x8xf32> to vector<1x8x8xf32>
    %26 = tpu.concatenate %22, %23, %24, %25 in 0 : vector<1x8x8xf32>, vector<1x8x8xf32>, vector<1x8x8xf32>, vector<1x8x8xf32> -> vector<4x8x8xf32>
    %27 = vector.extract_strided_slice %8 {offsets = [0, 64], sizes = [8, 8], strides = [1, 1]} : vector<8x96xf32> to vector<8x8xf32>
    %28 = vector.extract_strided_slice %8 {offsets = [0, 72], sizes = [8, 8], strides = [1, 1]} : vector<8x96xf32> to vector<8x8xf32>
    %29 = vector.extract_strided_slice %8 {offsets = [0, 80], sizes = [8, 8], strides = [1, 1]} : vector<8x96xf32> to vector<8x8xf32>
    %30 = vector.extract_strided_slice %8 {offsets = [0, 88], sizes = [8, 8], strides = [1, 1]} : vector<8x96xf32> to vector<8x8xf32>
    %31 = vector.shape_cast %27 : vector<8x8xf32> to vector<1x8x8xf32>
    %32 = vector.shape_cast %28 : vector<8x8xf32> to vector<1x8x8xf32>
    %33 = vector.shape_cast %29 : vector<8x8xf32> to vector<1x8x8xf32>
    %34 = vector.shape_cast %30 : vector<8x8xf32> to vector<1x8x8xf32>
    %35 = tpu.concatenate %31, %32, %33, %34 in 0 : vector<1x8x8xf32>, vector<1x8x8xf32>, vector<1x8x8xf32>, vector<1x8x8xf32> -> vector<4x8x8xf32>
    "tpu.trace_start"() <{level = 10 : i32, message = "hqd,hkd->hqk"}> : () -> ()
    %cst_8 = arith.constant dense<0.000000e+00> : vector<4x8x8xf32>
    %36 = tpu.matmul %17, %26, %cst_8 {dimension_numbers = #tpu.dot_dimension_numbers<[2], [2], [1], [1], [0, 0, 0, 1, 1, 1], [0], [0]>} : vector<4x8x8xf32>, vector<4x8x8xf32>, vector<4x8x8xf32> -> vector<4x8x8xf32>
    "tpu.trace_stop"() : () -> ()
    %cst_9 = arith.constant dense<0xFF800000> : vector<4x8xf32>
    %37 = vector.multi_reduction <maximumf>, %36, %cst_9 [2] : vector<4x8x8xf32> to vector<4x8xf32>
    %38 = vector.shape_cast %37 : vector<4x8xf32> to vector<4x8x1xf32>
    %39 = vector.broadcast %38 : vector<4x8x1xf32> to vector<4x8x8xf32>
    %40 = arith.subf %36, %39 : vector<4x8x8xf32>
    %41 = math.exp %40 : vector<4x8x8xf32>
    %cst_10 = arith.constant dense<0.000000e+00> : vector<4x8xf32>
    %42 = vector.multi_reduction <add>, %41, %cst_10 [2] : vector<4x8x8xf32> to vector<4x8xf32>
    %43 = vector.shape_cast %42 : vector<4x8xf32> to vector<4x8x1xf32>
    %44 = tpu.reciprocal %43 : vector<4x8x1xf32> -> vector<4x8x1xf32>
    %45 = vector.broadcast %44 : vector<4x8x1xf32> to vector<4x8x8xf32>
    %46 = arith.mulf %41, %45 : vector<4x8x8xf32>
    "tpu.trace_start"() <{level = 10 : i32, message = "hqk,hkd->hqd"}> : () -> ()
    %cst_11 = arith.constant dense<0.000000e+00> : vector<4x8x8xf32>
    %47 = tpu.matmul %46, %35, %cst_11 {dimension_numbers = #tpu.dot_dimension_numbers<[2], [1], [1], [2], [0, 0, 0, 1, 1, 2], [0], [0]>} : vector<4x8x8xf32>, vector<4x8x8xf32>, vector<4x8x8xf32> -> vector<4x8x8xf32>
    "tpu.trace_stop"() : () -> ()
    %48 = vector.extract_strided_slice %47 {offsets = [0, 0, 0], sizes = [1, 8, 8], strides = [1, 1, 1]} : vector<4x8x8xf32> to vector<1x8x8xf32>
    %49 = vector.shape_cast %48 : vector<1x8x8xf32> to vector<8x8xf32>
    %50 = vector.extract_strided_slice %47 {offsets = [1, 0, 0], sizes = [1, 8, 8], strides = [1, 1, 1]} : vector<4x8x8xf32> to vector<1x8x8xf32>
    %51 = vector.shape_cast %50 : vector<1x8x8xf32> to vector<8x8xf32>
    %52 = vector.extract_strided_slice %47 {offsets = [2, 0, 0], sizes = [1, 8, 8], strides = [1, 1, 1]} : vector<4x8x8xf32> to vector<1x8x8xf32>
    %53 = vector.shape_cast %52 : vector<1x8x8xf32> to vector<8x8xf32>
    %54 = vector.extract_strided_slice %47 {offsets = [3, 0, 0], sizes = [1, 8, 8], strides = [1, 1, 1]} : vector<4x8x8xf32> to vector<1x8x8xf32>
    %55 = vector.shape_cast %54 : vector<1x8x8xf32> to vector<8x8xf32>
    %56 = tpu.concatenate %49, %51, %53, %55 in 1 : vector<8x8xf32>, vector<8x8xf32>, vector<8x8xf32>, vector<8x8xf32> -> vector<8x32xf32>
    %c0_12 = arith.constant 0 : index
    %c0_13 = arith.constant 0 : index
    %c0_14 = arith.constant 0 : index
    %57 = vector.load %arg4[%c0_12, %c0_13, %c0_14] : memref<2x32x32xf32, #tpu.memory_space<vmem>>, vector<1x32x32xf32>
    %58 = vector.shape_cast %57 : vector<1x32x32xf32> to vector<32x32xf32>
    %cst_15 = arith.constant dense<0.000000e+00> : vector<8x32xf32>
    %59 = tpu.matmul %56, %58, %cst_15 {dimension_numbers = #tpu.dot_dimension_numbers<[1], [0], [0], [1], [0, 0, 1, 1], [], []>} : vector<8x32xf32>, vector<32x32xf32>, vector<8x32xf32> -> vector<8x32xf32>
    %c0_16 = arith.constant 0 : index
    %c0_17 = arith.constant 0 : index
    %c0_18 = arith.constant 0 : index
    %60 = vector.load %arg5[%c0_16, %c0_17, %c0_18] : memref<2x1x32xf32, #tpu.memory_space<vmem>>, vector<1x1x32xf32>
    %61 = vector.shape_cast %60 : vector<1x1x32xf32> to vector<1x32xf32>
    %62 = vector.broadcast %61 : vector<1x32xf32> to vector<8x32xf32>
    %63 = arith.addf %59, %62 : vector<8x32xf32>
    %64 = arith.addf %1, %63 : vector<8x32xf32>
    %c0_19 = arith.constant 0 : index
    %c0_20 = arith.constant 0 : index
    %c0_21 = arith.constant 0 : index
    %65 = vector.load %arg6[%c0_19, %c0_20, %c0_21] : memref<2x1x32xf32, #tpu.memory_space<vmem>>, vector<1x1x32xf32>
    %66 = vector.shape_cast %65 : vector<1x1x32xf32> to vector<1x32xf32>
    %c0_22 = arith.constant 0 : index
    %c0_23 = arith.constant 0 : index
    %c0_24 = arith.constant 0 : index
    %67 = vector.load %arg7[%c0_22, %c0_23, %c0_24] : memref<2x1x32xf32, #tpu.memory_space<vmem>>, vector<1x1x32xf32>
    %68 = vector.shape_cast %67 : vector<1x1x32xf32> to vector<1x32xf32>
    %cst_25 = arith.constant dense<0.000000e+00> : vector<8xf32>
    %69 = vector.multi_reduction <add>, %64, %cst_25 [1] : vector<8x32xf32> to vector<8xf32>
    %70 = vector.shape_cast %69 : vector<8xf32> to vector<8x1xf32>
    %cst_26 = arith.constant 3.200000e+01 : f32
    %71 = vector.broadcast %cst_26 : f32 to vector<8x1xf32>
    %72 = arith.divf %70, %71 : vector<8x1xf32>
    %73 = vector.broadcast %72 : vector<8x1xf32> to vector<8x32xf32>
    %74 = arith.subf %64, %73 : vector<8x32xf32>
    %75 = arith.mulf %74, %74 : vector<8x32xf32>
    %cst_27 = arith.constant dense<0.000000e+00> : vector<8xf32>
    %76 = vector.multi_reduction <add>, %75, %cst_27 [1] : vector<8x32xf32> to vector<8xf32>
    %77 = vector.shape_cast %76 : vector<8xf32> to vector<8x1xf32>
    %cst_28 = arith.constant 3.200000e+01 : f32
    %78 = vector.broadcast %cst_28 : f32 to vector<8x1xf32>
    %79 = arith.divf %77, %78 : vector<8x1xf32>
    %80 = vector.broadcast %72 : vector<8x1xf32> to vector<8x32xf32>
    %81 = arith.subf %64, %80 : vector<8x32xf32>
    %cst_29 = arith.constant 9.99999974E-6 : f32
    %82 = vector.broadcast %cst_29 : f32 to vector<8x1xf32>
    %83 = arith.addf %79, %82 : vector<8x1xf32>
    %84 = math.rsqrt %83 : vector<8x1xf32>
    %85 = vector.broadcast %84 : vector<8x1xf32> to vector<8x32xf32>
    %86 = arith.mulf %81, %85 : vector<8x32xf32>
    %87 = vector.broadcast %66 : vector<1x32xf32> to vector<8x32xf32>
    %88 = arith.mulf %86, %87 : vector<8x32xf32>
    %89 = vector.broadcast %68 : vector<1x32xf32> to vector<8x32xf32>
    %90 = arith.addf %88, %89 : vector<8x32xf32>
    %c0_30 = arith.constant 0 : index
    %c0_31 = arith.constant 0 : index
    %c0_32 = arith.constant 0 : index
    %91 = vector.load %arg8[%c0_30, %c0_31, %c0_32] : memref<2x32x64xf32, #tpu.memory_space<vmem>>, vector<1x32x64xf32>
    %92 = vector.shape_cast %91 : vector<1x32x64xf32> to vector<32x64xf32>
    %cst_33 = arith.constant dense<0.000000e+00> : vector<8x64xf32>
    %93 = tpu.matmul %90, %92, %cst_33 {dimension_numbers = #tpu.dot_dimension_numbers<[1], [0], [0], [1], [0, 0, 1, 1], [], []>} : vector<8x32xf32>, vector<32x64xf32>, vector<8x64xf32> -> vector<8x64xf32>
    %c0_34 = arith.constant 0 : index
    %c0_35 = arith.constant 0 : index
    %c0_36 = arith.constant 0 : index
    %94 = vector.load %arg9[%c0_34, %c0_35, %c0_36] : memref<2x1x64xf32, #tpu.memory_space<vmem>>, vector<1x1x64xf32>
    %95 = vector.shape_cast %94 : vector<1x1x64xf32> to vector<1x64xf32>
    %96 = vector.broadcast %95 : vector<1x64xf32> to vector<8x64xf32>
    %97 = arith.addf %93, %96 : vector<8x64xf32>
    %cst_37 = arith.constant 0.000000e+00 : f32
    %98 = vector.broadcast %cst_37 : f32 to vector<8x64xf32>
    %99 = arith.maximumf %97, %98 : vector<8x64xf32>
    %c0_38 = arith.constant 0 : index
    %c0_39 = arith.constant 0 : index
    %c0_40 = arith.constant 0 : index
    %100 = vector.load %arg10[%c0_38, %c0_39, %c0_40] : memref<2x64x32xf32, #tpu.memory_space<vmem>>, vector<1x64x32xf32>
    %101 = vector.shape_cast %100 : vector<1x64x32xf32> to vector<64x32xf32>
    %cst_41 = arith.constant dense<0.000000e+00> : vector<8x32xf32>
    %102 = tpu.matmul %99, %101, %cst_41 {dimension_numbers = #tpu.dot_dimension_numbers<[1], [0], [0], [1], [0, 0, 1, 1], [], []>} : vector<8x64xf32>, vector<64x32xf32>, vector<8x32xf32> -> vector<8x32xf32>
    %c0_42 = arith.constant 0 : index
    %c0_43 = arith.constant 0 : index
    %c0_44 = arith.constant 0 : index
    %103 = vector.load %arg11[%c0_42, %c0_43, %c0_44] : memref<2x1x32xf32, #tpu.memory_space<vmem>>, vector<1x1x32xf32>
    %104 = vector.shape_cast %103 : vector<1x1x32xf32> to vector<1x32xf32>
    %105 = vector.broadcast %104 : vector<1x32xf32> to vector<8x32xf32>
    %106 = arith.addf %102, %105 : vector<8x32xf32>
    %107 = arith.addf %90, %106 : vector<8x32xf32>
    %c0_45 = arith.constant 0 : index
    %c0_46 = arith.constant 0 : index
    %c0_47 = arith.constant 0 : index
    %108 = vector.load %arg12[%c0_45, %c0_46, %c0_47] : memref<2x1x32xf32, #tpu.memory_space<vmem>>, vector<1x1x32xf32>
    %109 = vector.shape_cast %108 : vector<1x1x32xf32> to vector<1x32xf32>
    %c0_48 = arith.constant 0 : index
    %c0_49 = arith.constant 0 : index
    %c0_50 = arith.constant 0 : index
    %110 = vector.load %arg13[%c0_48, %c0_49, %c0_50] : memref<2x1x32xf32, #tpu.memory_space<vmem>>, vector<1x1x32xf32>
    %111 = vector.shape_cast %110 : vector<1x1x32xf32> to vector<1x32xf32>
    %cst_51 = arith.constant dense<0.000000e+00> : vector<8xf32>
    %112 = vector.multi_reduction <add>, %107, %cst_51 [1] : vector<8x32xf32> to vector<8xf32>
    %113 = vector.shape_cast %112 : vector<8xf32> to vector<8x1xf32>
    %cst_52 = arith.constant 3.200000e+01 : f32
    %114 = vector.broadcast %cst_52 : f32 to vector<8x1xf32>
    %115 = arith.divf %113, %114 : vector<8x1xf32>
    %116 = vector.broadcast %115 : vector<8x1xf32> to vector<8x32xf32>
    %117 = arith.subf %107, %116 : vector<8x32xf32>
    %118 = arith.mulf %117, %117 : vector<8x32xf32>
    %cst_53 = arith.constant dense<0.000000e+00> : vector<8xf32>
    %119 = vector.multi_reduction <add>, %118, %cst_53 [1] : vector<8x32xf32> to vector<8xf32>
    %120 = vector.shape_cast %119 : vector<8xf32> to vector<8x1xf32>
    %cst_54 = arith.constant 3.200000e+01 : f32
    %121 = vector.broadcast %cst_54 : f32 to vector<8x1xf32>
    %122 = arith.divf %120, %121 : vector<8x1xf32>
    %123 = vector.broadcast %115 : vector<8x1xf32> to vector<8x32xf32>
    %124 = arith.subf %107, %123 : vector<8x32xf32>
    %cst_55 = arith.constant 9.99999974E-6 : f32
    %125 = vector.broadcast %cst_55 : f32 to vector<8x1xf32>
    %126 = arith.addf %122, %125 : vector<8x1xf32>
    %127 = math.rsqrt %126 : vector<8x1xf32>
    %128 = vector.broadcast %127 : vector<8x1xf32> to vector<8x32xf32>
    %129 = arith.mulf %124, %128 : vector<8x32xf32>
    %130 = vector.broadcast %109 : vector<1x32xf32> to vector<8x32xf32>
    %131 = arith.mulf %129, %130 : vector<8x32xf32>
    %132 = vector.broadcast %111 : vector<1x32xf32> to vector<8x32xf32>
    %133 = arith.addf %131, %132 : vector<8x32xf32>
    %c1 = arith.constant 1 : index
    %c0_56 = arith.constant 0 : index
    %c0_57 = arith.constant 0 : index
    %134 = vector.load %arg2[%c1, %c0_56, %c0_57] : memref<2x32x96xf32, #tpu.memory_space<vmem>>, vector<1x32x96xf32>
    %135 = vector.shape_cast %134 : vector<1x32x96xf32> to vector<32x96xf32>
    %cst_58 = arith.constant dense<0.000000e+00> : vector<8x96xf32>
    %136 = tpu.matmul %133, %135, %cst_58 {dimension_numbers = #tpu.dot_dimension_numbers<[1], [0], [0], [1], [0, 0, 1, 1], [], []>} : vector<8x32xf32>, vector<32x96xf32>, vector<8x96xf32> -> vector<8x96xf32>
    %c1_59 = arith.constant 1 : index
    %c0_60 = arith.constant 0 : index
    %c0_61 = arith.constant 0 : index
    %137 = vector.load %arg3[%c1_59, %c0_60, %c0_61] : memref<2x1x96xf32, #tpu.memory_space<vmem>>, vector<1x1x96xf32>
    %138 = vector.shape_cast %137 : vector<1x1x96xf32> to vector<1x96xf32>
    %139 = vector.broadcast %138 : vector<1x96xf32> to vector<8x96xf32>
    %140 = arith.addf %136, %139 : vector<8x96xf32>
    %141 = vector.extract_strided_slice %140 {offsets = [0, 0], sizes = [8, 8], strides = [1, 1]} : vector<8x96xf32> to vector<8x8xf32>
    %142 = vector.extract_strided_slice %140 {offsets = [0, 8], sizes = [8, 8], strides = [1, 1]} : vector<8x96xf32> to vector<8x8xf32>
    %143 = vector.extract_strided_slice %140 {offsets = [0, 16], sizes = [8, 8], strides = [1, 1]} : vector<8x96xf32> to vector<8x8xf32>
    %144 = vector.extract_strided_slice %140 {offsets = [0, 24], sizes = [8, 8], strides = [1, 1]} : vector<8x96xf32> to vector<8x8xf32>
    %145 = vector.shape_cast %141 : vector<8x8xf32> to vector<1x8x8xf32>
    %146 = vector.shape_cast %142 : vector<8x8xf32> to vector<1x8x8xf32>
    %147 = vector.shape_cast %143 : vector<8x8xf32> to vector<1x8x8xf32>
    %148 = vector.shape_cast %144 : vector<8x8xf32> to vector<1x8x8xf32>
    %149 = tpu.concatenate %145, %146, %147, %148 in 0 : vector<1x8x8xf32>, vector<1x8x8xf32>, vector<1x8x8xf32>, vector<1x8x8xf32> -> vector<4x8x8xf32>
    %150 = vector.extract_strided_slice %140 {offsets = [0, 32], sizes = [8, 8], strides = [1, 1]} : vector<8x96xf32> to vector<8x8xf32>
    %151 = vector.extract_strided_slice %140 {offsets = [0, 40], sizes = [8, 8], strides = [1, 1]} : vector<8x96xf32> to vector<8x8xf32>
    %152 = vector.extract_strided_slice %140 {offsets = [0, 48], sizes = [8, 8], strides = [1, 1]} : vector<8x96xf32> to vector<8x8xf32>
    %153 = vector.extract_strided_slice %140 {offsets = [0, 56], sizes = [8, 8], strides = [1, 1]} : vector<8x96xf32> to vector<8x8xf32>
    %154 = vector.shape_cast %150 : vector<8x8xf32> to vector<1x8x8xf32>
    %155 = vector.shape_cast %151 : vector<8x8xf32> to vector<1x8x8xf32>
    %156 = vector.shape_cast %152 : vector<8x8xf32> to vector<1x8x8xf32>
    %157 = vector.shape_cast %153 : vector<8x8xf32> to vector<1x8x8xf32>
    %158 = tpu.concatenate %154, %155, %156, %157 in 0 : vector<1x8x8xf32>, vector<1x8x8xf32>, vector<1x8x8xf32>, vector<1x8x8xf32> -> vector<4x8x8xf32>
    %159 = vector.extract_strided_slice %140 {offsets = [0, 64], sizes = [8, 8], strides = [1, 1]} : vector<8x96xf32> to vector<8x8xf32>
    %160 = vector.extract_strided_slice %140 {offsets = [0, 72], sizes = [8, 8], strides = [1, 1]} : vector<8x96xf32> to vector<8x8xf32>
    %161 = vector.extract_strided_slice %140 {offsets = [0, 80], sizes = [8, 8], strides = [1, 1]} : vector<8x96xf32> to vector<8x8xf32>
    %162 = vector.extract_strided_slice %140 {offsets = [0, 88], sizes = [8, 8], strides = [1, 1]} : vector<8x96xf32> to vector<8x8xf32>
    %163 = vector.shape_cast %159 : vector<8x8xf32> to vector<1x8x8xf32>
    %164 = vector.shape_cast %160 : vector<8x8xf32> to vector<1x8x8xf32>
    %165 = vector.shape_cast %161 : vector<8x8xf32> to vector<1x8x8xf32>
    %166 = vector.shape_cast %162 : vector<8x8xf32> to vector<1x8x8xf32>
    %167 = tpu.concatenate %163, %164, %165, %166 in 0 : vector<1x8x8xf32>, vector<1x8x8xf32>, vector<1x8x8xf32>, vector<1x8x8xf32> -> vector<4x8x8xf32>
    "tpu.trace_start"() <{level = 10 : i32, message = "hqd,hkd->hqk"}> : () -> ()
    %cst_62 = arith.constant dense<0.000000e+00> : vector<4x8x8xf32>
    %168 = tpu.matmul %149, %158, %cst_62 {dimension_numbers = #tpu.dot_dimension_numbers<[2], [2], [1], [1], [0, 0, 0, 1, 1, 1], [0], [0]>} : vector<4x8x8xf32>, vector<4x8x8xf32>, vector<4x8x8xf32> -> vector<4x8x8xf32>
    "tpu.trace_stop"() : () -> ()
    %cst_63 = arith.constant dense<0xFF800000> : vector<4x8xf32>
    %169 = vector.multi_reduction <maximumf>, %168, %cst_63 [2] : vector<4x8x8xf32> to vector<4x8xf32>
    %170 = vector.shape_cast %169 : vector<4x8xf32> to vector<4x8x1xf32>
    %171 = vector.broadcast %170 : vector<4x8x1xf32> to vector<4x8x8xf32>
    %172 = arith.subf %168, %171 : vector<4x8x8xf32>
    %173 = math.exp %172 : vector<4x8x8xf32>
    %cst_64 = arith.constant dense<0.000000e+00> : vector<4x8xf32>
    %174 = vector.multi_reduction <add>, %173, %cst_64 [2] : vector<4x8x8xf32> to vector<4x8xf32>
    %175 = vector.shape_cast %174 : vector<4x8xf32> to vector<4x8x1xf32>
    %176 = tpu.reciprocal %175 : vector<4x8x1xf32> -> vector<4x8x1xf32>
    %177 = vector.broadcast %176 : vector<4x8x1xf32> to vector<4x8x8xf32>
    %178 = arith.mulf %173, %177 : vector<4x8x8xf32>
    "tpu.trace_start"() <{level = 10 : i32, message = "hqk,hkd->hqd"}> : () -> ()
    %cst_65 = arith.constant dense<0.000000e+00> : vector<4x8x8xf32>
    %179 = tpu.matmul %178, %167, %cst_65 {dimension_numbers = #tpu.dot_dimension_numbers<[2], [1], [1], [2], [0, 0, 0, 1, 1, 2], [0], [0]>} : vector<4x8x8xf32>, vector<4x8x8xf32>, vector<4x8x8xf32> -> vector<4x8x8xf32>
    "tpu.trace_stop"() : () -> ()
    %180 = vector.extract_strided_slice %179 {offsets = [0, 0, 0], sizes = [1, 8, 8], strides = [1, 1, 1]} : vector<4x8x8xf32> to vector<1x8x8xf32>
    %181 = vector.shape_cast %180 : vector<1x8x8xf32> to vector<8x8xf32>
    %182 = vector.extract_strided_slice %179 {offsets = [1, 0, 0], sizes = [1, 8, 8], strides = [1, 1, 1]} : vector<4x8x8xf32> to vector<1x8x8xf32>
    %183 = vector.shape_cast %182 : vector<1x8x8xf32> to vector<8x8xf32>
    %184 = vector.extract_strided_slice %179 {offsets = [2, 0, 0], sizes = [1, 8, 8], strides = [1, 1, 1]} : vector<4x8x8xf32> to vector<1x8x8xf32>
    %185 = vector.shape_cast %184 : vector<1x8x8xf32> to vector<8x8xf32>
    %186 = vector.extract_strided_slice %179 {offsets = [3, 0, 0], sizes = [1, 8, 8], strides = [1, 1, 1]} : vector<4x8x8xf32> to vector<1x8x8xf32>
    %187 = vector.shape_cast %186 : vector<1x8x8xf32> to vector<8x8xf32>
    %188 = tpu.concatenate %181, %183, %185, %187 in 1 : vector<8x8xf32>, vector<8x8xf32>, vector<8x8xf32>, vector<8x8xf32> -> vector<8x32xf32>
    %c1_66 = arith.constant 1 : index
    %c0_67 = arith.constant 0 : index
    %c0_68 = arith.constant 0 : index
    %189 = vector.load %arg4[%c1_66, %c0_67, %c0_68] : memref<2x32x32xf32, #tpu.memory_space<vmem>>, vector<1x32x32xf32>
    %190 = vector.shape_cast %189 : vector<1x32x32xf32> to vector<32x32xf32>
    %cst_69 = arith.constant dense<0.000000e+00> : vector<8x32xf32>
    %191 = tpu.matmul %188, %190, %cst_69 {dimension_numbers = #tpu.dot_dimension_numbers<[1], [0], [0], [1], [0, 0, 1, 1], [], []>} : vector<8x32xf32>, vector<32x32xf32>, vector<8x32xf32> -> vector<8x32xf32>
    %c1_70 = arith.constant 1 : index
    %c0_71 = arith.constant 0 : index
    %c0_72 = arith.constant 0 : index
    %192 = vector.load %arg5[%c1_70, %c0_71, %c0_72] : memref<2x1x32xf32, #tpu.memory_space<vmem>>, vector<1x1x32xf32>
    %193 = vector.shape_cast %192 : vector<1x1x32xf32> to vector<1x32xf32>
    %194 = vector.broadcast %193 : vector<1x32xf32> to vector<8x32xf32>
    %195 = arith.addf %191, %194 : vector<8x32xf32>
    %196 = arith.addf %133, %195 : vector<8x32xf32>
    %c1_73 = arith.constant 1 : index
    %c0_74 = arith.constant 0 : index
    %c0_75 = arith.constant 0 : index
    %197 = vector.load %arg6[%c1_73, %c0_74, %c0_75] : memref<2x1x32xf32, #tpu.memory_space<vmem>>, vector<1x1x32xf32>
    %198 = vector.shape_cast %197 : vector<1x1x32xf32> to vector<1x32xf32>
    %c1_76 = arith.constant 1 : index
    %c0_77 = arith.constant 0 : index
    %c0_78 = arith.constant 0 : index
    %199 = vector.load %arg7[%c1_76, %c0_77, %c0_78] : memref<2x1x32xf32, #tpu.memory_space<vmem>>, vector<1x1x32xf32>
    %200 = vector.shape_cast %199 : vector<1x1x32xf32> to vector<1x32xf32>
    %cst_79 = arith.constant dense<0.000000e+00> : vector<8xf32>
    %201 = vector.multi_reduction <add>, %196, %cst_79 [1] : vector<8x32xf32> to vector<8xf32>
    %202 = vector.shape_cast %201 : vector<8xf32> to vector<8x1xf32>
    %cst_80 = arith.constant 3.200000e+01 : f32
    %203 = vector.broadcast %cst_80 : f32 to vector<8x1xf32>
    %204 = arith.divf %202, %203 : vector<8x1xf32>
    %205 = vector.broadcast %204 : vector<8x1xf32> to vector<8x32xf32>
    %206 = arith.subf %196, %205 : vector<8x32xf32>
    %207 = arith.mulf %206, %206 : vector<8x32xf32>
    %cst_81 = arith.constant dense<0.000000e+00> : vector<8xf32>
    %208 = vector.multi_reduction <add>, %207, %cst_81 [1] : vector<8x32xf32> to vector<8xf32>
    %209 = vector.shape_cast %208 : vector<8xf32> to vector<8x1xf32>
    %cst_82 = arith.constant 3.200000e+01 : f32
    %210 = vector.broadcast %cst_82 : f32 to vector<8x1xf32>
    %211 = arith.divf %209, %210 : vector<8x1xf32>
    %212 = vector.broadcast %204 : vector<8x1xf32> to vector<8x32xf32>
    %213 = arith.subf %196, %212 : vector<8x32xf32>
    %cst_83 = arith.constant 9.99999974E-6 : f32
    %214 = vector.broadcast %cst_83 : f32 to vector<8x1xf32>
    %215 = arith.addf %211, %214 : vector<8x1xf32>
    %216 = math.rsqrt %215 : vector<8x1xf32>
    %217 = vector.broadcast %216 : vector<8x1xf32> to vector<8x32xf32>
    %218 = arith.mulf %213, %217 : vector<8x32xf32>
    %219 = vector.broadcast %198 : vector<1x32xf32> to vector<8x32xf32>
    %220 = arith.mulf %218, %219 : vector<8x32xf32>
    %221 = vector.broadcast %200 : vector<1x32xf32> to vector<8x32xf32>
    %222 = arith.addf %220, %221 : vector<8x32xf32>
    %c1_84 = arith.constant 1 : index
    %c0_85 = arith.constant 0 : index
    %c0_86 = arith.constant 0 : index
    %223 = vector.load %arg8[%c1_84, %c0_85, %c0_86] : memref<2x32x64xf32, #tpu.memory_space<vmem>>, vector<1x32x64xf32>
    %224 = vector.shape_cast %223 : vector<1x32x64xf32> to vector<32x64xf32>
    %cst_87 = arith.constant dense<0.000000e+00> : vector<8x64xf32>
    %225 = tpu.matmul %222, %224, %cst_87 {dimension_numbers = #tpu.dot_dimension_numbers<[1], [0], [0], [1], [0, 0, 1, 1], [], []>} : vector<8x32xf32>, vector<32x64xf32>, vector<8x64xf32> -> vector<8x64xf32>
    %c1_88 = arith.constant 1 : index
    %c0_89 = arith.constant 0 : index
    %c0_90 = arith.constant 0 : index
    %226 = vector.load %arg9[%c1_88, %c0_89, %c0_90] : memref<2x1x64xf32, #tpu.memory_space<vmem>>, vector<1x1x64xf32>
    %227 = vector.shape_cast %226 : vector<1x1x64xf32> to vector<1x64xf32>
    %228 = vector.broadcast %227 : vector<1x64xf32> to vector<8x64xf32>
    %229 = arith.addf %225, %228 : vector<8x64xf32>
    %cst_91 = arith.constant 0.000000e+00 : f32
    %230 = vector.broadcast %cst_91 : f32 to vector<8x64xf32>
    %231 = arith.maximumf %229, %230 : vector<8x64xf32>
    %c1_92 = arith.constant 1 : index
    %c0_93 = arith.constant 0 : index
    %c0_94 = arith.constant 0 : index
    %232 = vector.load %arg10[%c1_92, %c0_93, %c0_94] : memref<2x64x32xf32, #tpu.memory_space<vmem>>, vector<1x64x32xf32>
    %233 = vector.shape_cast %232 : vector<1x64x32xf32> to vector<64x32xf32>
    %cst_95 = arith.constant dense<0.000000e+00> : vector<8x32xf32>
    %234 = tpu.matmul %231, %233, %cst_95 {dimension_numbers = #tpu.dot_dimension_numbers<[1], [0], [0], [1], [0, 0, 1, 1], [], []>} : vector<8x64xf32>, vector<64x32xf32>, vector<8x32xf32> -> vector<8x32xf32>
    %c1_96 = arith.constant 1 : index
    %c0_97 = arith.constant 0 : index
    %c0_98 = arith.constant 0 : index
    %235 = vector.load %arg11[%c1_96, %c0_97, %c0_98] : memref<2x1x32xf32, #tpu.memory_space<vmem>>, vector<1x1x32xf32>
    %236 = vector.shape_cast %235 : vector<1x1x32xf32> to vector<1x32xf32>
    %237 = vector.broadcast %236 : vector<1x32xf32> to vector<8x32xf32>
    %238 = arith.addf %234, %237 : vector<8x32xf32>
    %239 = arith.addf %222, %238 : vector<8x32xf32>
    %c1_99 = arith.constant 1 : index
    %c0_100 = arith.constant 0 : index
    %c0_101 = arith.constant 0 : index
    %240 = vector.load %arg12[%c1_99, %c0_100, %c0_101] : memref<2x1x32xf32, #tpu.memory_space<vmem>>, vector<1x1x32xf32>
    %241 = vector.shape_cast %240 : vector<1x1x32xf32> to vector<1x32xf32>
    %c1_102 = arith.constant 1 : index
    %c0_103 = arith.constant 0 : index
    %c0_104 = arith.constant 0 : index
    %242 = vector.load %arg13[%c1_102, %c0_103, %c0_104] : memref<2x1x32xf32, #tpu.memory_space<vmem>>, vector<1x1x32xf32>
    %243 = vector.shape_cast %242 : vector<1x1x32xf32> to vector<1x32xf32>
    %cst_105 = arith.constant dense<0.000000e+00> : vector<8xf32>
    %244 = vector.multi_reduction <add>, %239, %cst_105 [1] : vector<8x32xf32> to vector<8xf32>
    %245 = vector.shape_cast %244 : vector<8xf32> to vector<8x1xf32>
    %cst_106 = arith.constant 3.200000e+01 : f32
    %246 = vector.broadcast %cst_106 : f32 to vector<8x1xf32>
    %247 = arith.divf %245, %246 : vector<8x1xf32>
    %248 = vector.broadcast %247 : vector<8x1xf32> to vector<8x32xf32>
    %249 = arith.subf %239, %248 : vector<8x32xf32>
    %250 = arith.mulf %249, %249 : vector<8x32xf32>
    %cst_107 = arith.constant dense<0.000000e+00> : vector<8xf32>
    %251 = vector.multi_reduction <add>, %250, %cst_107 [1] : vector<8x32xf32> to vector<8xf32>
    %252 = vector.shape_cast %251 : vector<8xf32> to vector<8x1xf32>
    %cst_108 = arith.constant 3.200000e+01 : f32
    %253 = vector.broadcast %cst_108 : f32 to vector<8x1xf32>
    %254 = arith.divf %252, %253 : vector<8x1xf32>
    %255 = vector.broadcast %247 : vector<8x1xf32> to vector<8x32xf32>
    %256 = arith.subf %239, %255 : vector<8x32xf32>
    %cst_109 = arith.constant 9.99999974E-6 : f32
    %257 = vector.broadcast %cst_109 : f32 to vector<8x1xf32>
    %258 = arith.addf %254, %257 : vector<8x1xf32>
    %259 = math.rsqrt %258 : vector<8x1xf32>
    %260 = vector.broadcast %259 : vector<8x1xf32> to vector<8x32xf32>
    %261 = arith.mulf %256, %260 : vector<8x32xf32>
    %262 = vector.broadcast %241 : vector<1x32xf32> to vector<8x32xf32>
    %263 = arith.mulf %261, %262 : vector<8x32xf32>
    %264 = vector.broadcast %243 : vector<1x32xf32> to vector<8x32xf32>
    %265 = arith.addf %263, %264 : vector<8x32xf32>
    %c0_110 = arith.constant 0 : index
    %c0_111 = arith.constant 0 : index
    %c0_112 = arith.constant 0 : index
    %266 = vector.load %arg14[%c0_110, %c0_111, %c0_112] : memref<1x8x32xf32, #tpu.memory_space<vmem>>, vector<1x8x32xf32>
    %267 = vector.shape_cast %266 : vector<1x8x32xf32> to vector<8x32xf32>
    %268 = vector.shape_cast %265 : vector<8x32xf32> to vector<1x8x32xf32>
    tpu.vector_store %arg14[%c0_110, %c0_111, %c0_112], %268 {strides = array<i32>} : memref<1x8x32xf32, #tpu.memory_space<vmem>>, vector<1x8x32xf32>,
    return
  }
  func.func @transform_0(%arg0: i32) -> (i32, i32, i32) {
    %c0_i32 = arith.constant 0 : i32
    %c0_i32_0 = arith.constant 0 : i32
    %c0_i32_1 = arith.constant 0 : i32
    return %arg0, %c0_i32, %c0_i32_0 : i32, i32, i32
  }
  func.func @transform_1(%arg0: i32) -> (i32, i32, i32) {
    %c0_i32 = arith.constant 0 : i32
    %c0_i32_0 = arith.constant 0 : i32
    %c0_i32_1 = arith.constant 0 : i32
    %c0_i32_2 = arith.constant 0 : i32
    return %c0_i32, %c0_i32_0, %c0_i32_1 : i32, i32, i32
  }
  func.func @transform_2(%arg0: i32) -> (i32, i32, i32) {
    %c0_i32 = arith.constant 0 : i32
    %c0_i32_0 = arith.constant 0 : i32
    %c0_i32_1 = arith.constant 0 : i32
    %c0_i32_2 = arith.constant 0 : i32
    return %c0_i32, %c0_i32_0, %c0_i32_1 : i32, i32, i32
  }
  func.func @transform_3(%arg0: i32) -> (i32, i32, i32) {
    %c0_i32 = arith.constant 0 : i32
    %c0_i32_0 = arith.constant 0 : i32
    %c0_i32_1 = arith.constant 0 : i32
    %c0_i32_2 = arith.constant 0 : i32
    return %c0_i32, %c0_i32_0, %c0_i32_1 : i32, i32, i32
  }
  func.func @transform_4(%arg0: i32) -> (i32, i32, i32) {
    %c0_i32 = arith.constant 0 : i32
    %c0_i32_0 = arith.constant 0 : i32
    %c0_i32_1 = arith.constant 0 : i32
    %c0_i32_2 = arith.constant 0 : i32
    return %c0_i32, %c0_i32_0, %c0_i32_1 : i32, i32, i32
  }
  func.func @transform_5(%arg0: i32) -> (i32, i32, i32) {
    %c0_i32 = arith.constant 0 : i32
    %c0_i32_0 = arith.constant 0 : i32
    %c0_i32_1 = arith.constant 0 : i32
    %c0_i32_2 = arith.constant 0 : i32
    return %c0_i32, %c0_i32_0, %c0_i32_1 : i32, i32, i32
  }
  func.func @transform_6(%arg0: i32) -> (i32, i32, i32) {
    %c0_i32 = arith.constant 0 : i32
    %c0_i32_0 = arith.constant 0 : i32
    %c0_i32_1 = arith.constant 0 : i32
    %c0_i32_2 = arith.constant 0 : i32
    return %c0_i32, %c0_i32_0, %c0_i32_1 : i32, i32, i32
  }
  func.func @transform_7(%arg0: i32) -> (i32, i32, i32) {
    %c0_i32 = arith.constant 0 : i32
    %c0_i32_0 = arith.constant 0 : i32
    %c0_i32_1 = arith.constant 0 : i32
    %c0_i32_2 = arith.constant 0 : i32
    return %c0_i32, %c0_i32_0, %c0_i32_1 : i32, i32, i32
  }
  func.func @transform_8(%arg0: i32) -> (i32, i32, i32) {
    %c0_i32 = arith.constant 0 : i32
    %c0_i32_0 = arith.constant 0 : i32
    %c0_i32_1 = arith.constant 0 : i32
    %c0_i32_2 = arith.constant 0 : i32
    return %c0_i32, %c0_i32_0, %c0_i32_1 : i32, i32, i32
  }
  func.func @transform_9(%arg0: i32) -> (i32, i32, i32) {
    %c0_i32 = arith.constant 0 : i32
    %c0_i32_0 = arith.constant 0 : i32
    %c0_i32_1 = arith.constant 0 : i32
    %c0_i32_2 = arith.constant 0 : i32
    return %c0_i32, %c0_i32_0, %c0_i32_1 : i32, i32, i32
  }
  func.func @transform_10(%arg0: i32) -> (i32, i32, i32) {
    %c0_i32 = arith.constant 0 : i32
    %c0_i32_0 = arith.constant 0 : i32
    %c0_i32_1 = arith.constant 0 : i32
    %c0_i32_2 = arith.constant 0 : i32
    return %c0_i32, %c0_i32_0, %c0_i32_1 : i32, i32, i32
  }
  func.func @transform_11(%arg0: i32) -> (i32, i32, i32) {
    %c0_i32 = arith.constant 0 : i32
    %c0_i32_0 = arith.constant 0 : i32
    %c0_i32_1 = arith.constant 0 : i32
    %c0_i32_2 = arith.constant 0 : i32
    return %c0_i32, %c0_i32_0, %c0_i32_1 : i32, i32, i32
  }
  func.func @transform_12(%arg0: i32) -> (i32, i32, i32) {
    %c0_i32 = arith.constant 0 : i32
    %c0_i32_0 = arith.constant 0 : i32
    %c0_i32_1 = arith.constant 0 : i32
    %c0_i32_2 = arith.constant 0 : i32
    return %c0_i32, %c0_i32_0, %c0_i32_1 : i32, i32, i32
  }
  func.func @transform_13(%arg0: i32) -> (i32, i32, i32) {
    %c0_i32 = arith.constant 0 : i32
    %c0_i32_0 = arith.constant 0 : i32
    %c0_i32_1 = arith.constant 0 : i32
    return %arg0, %c0_i32, %c0_i32_0 : i32, i32, i32
  }
}

</mosaic_0001>

<bundles_post_ra>
// kernel: tpu_custom_call.1
= control target key start
LH: loop header
LB: loop body
LE: loop exit
PB: predicated region body
PF: predicated region fallthrough
CT: control target
= control target key end

     0   :  { %18 = vsyncpa [#allocation3], 0  ;;  %s3936_s0 = inlined_call_operand.hbm [shape: f32[2,8,32], index: 0, kind: input, shape index: {}]   ;;  %s3937_s1 = inlined_call_operand.vmem [shape: f32[2,32,96], index: 1, kind: input, shape index: {}]   ;;  %s3938_s2 = inlined_call_operand.vmem [shape: f32[2,1,96], index: 2, kind: input, shape index: {}]   ;;  %s3939_s3 = inlined_call_operand.vmem [shape: f32[2,32,32], index: 3, kind: input, shape index: {}]   ;;  %s3940_s4 = inlined_call_operand.vmem [shape: f32[2,1,32], index: 4, kind: input, shape index: {}]   ;;  %s3941_s5 = inlined_call_operand.vmem [shape: f32[2,1,32], index: 5, kind: input, shape index: {}]   ;;  %s3942_s6 = inlined_call_operand.vmem [shape: f32[2,1,32], index: 6, kind: input, shape index: {}]   ;;  %s3943_s7 = inlined_call_operand.vmem [shape: f32[2,32,64], index: 7, kind: input, shape index: {}]   ;;  %s3944_s8 = inlined_call_operand.vmem [shape: f32[2,1,64], index: 8, kind: input, shape index: {}]   ;;  %s3945_s9 = inlined_call_operand.vmem [shape: f32[2,64,32], index: 9, kind: input, shape index: {}]   ;;  %s3946_s10 = inlined_call_operand.vmem [shape: f32[2,1,32], index: 10, kind: input, shape index: {}]   ;;  %s3947_s11 = inlined_call_operand.vmem [shape: f32[2,1,32], index: 11, kind: input, shape index: {}]   ;;  %s3948_s12 = inlined_call_operand.vmem [shape: f32[2,1,32], index: 12, kind: input, shape index: {}]   ;;  %s3949_s13 = inlined_call_operand.hbm [shape: f32[2,8,32], index: 13, kind: output, shape index: {}]  }
   0x1   :  { %20 = vsyncpa [#allocation3 + $0x1], 0 }
   0x2   :  { %21 = vsyncpa [#allocation4], 0 }
   0x3   :  { %23 = vsyncpa [#allocation4 + $0x1], 0  ;;  %s3400_s25 = smov 0   ;;  %s3402_s26 = smov 0  }
   0x4   :  { %s3404_s27 = smov 0   ;;  %s3406_s28 = smov 0  }
   0x5 LB: > { %3965 = sst [smem:[#allocation8_spill]] %s3303_s25  ;;  %s3421_s29 = sadd.s32 4294967295, %s3315_s28   ;;  %s3315_s28 = sphi %s3406_s28, %s3988_s28   ;;  %s3311_s27 = sphi %s3404_s27, %s3990_s27   ;;  %s3307_s26 = sphi %s3402_s26, %s3992_s26   ;;  %s3303_s25 = sphi %s3400_s25, %s3991_s25  }
   0x6   : > { %3966 = sst [smem:[#allocation9_spill]] %s3311_s27  ;;  %s2710_s30 = sadd.s32 4294967294, %s3315_s28  }
   0x7   : > { %s3425_s14 = sadd.s32 1, %s3315_s28   ;;  %s36_s15 = sadd.s32 1, %s3311_s27 }
   0x8   : > { %3967 = sst [smem:[#allocation10_spill]] %s3425_s14  ;;  %s33_s16 = ssub.s32 %s3315_s28, %s3425_s14 }
   0x9   : > { %p43_p0 = scmp.ne.s32.totalorder %s3311_s27, %s3307_s26  ;;  %p34_p1 = scmp.eq.s32.totalorder %s33_s16, 0 }
   0xa   : > { %p44_p2 = scmp.eq.s32.totalorder %s3315_s28, 0  ;;  %p49_p3 = scmp.ne.s32.totalorder %s3307_s26, %s3303_s25 }
   0xb   : > { %p50_p4 = scmp.eq.s32.totalorder %s3421_s29, 0  ;;  %p325_p7 = scmp.eq.s32.totalorder %s3421_s29, 1 }
   0xc   : > { %s3437_s17 = scalar_select %p34_p1, %s3311_s27, %s36_s15  }
   0xd   : > { %p3439_p5 = por %p44_p2, %p43_p0  ;;  %p3443_p6 = por %p50_p4, %p49_p3 }
   0xe   : > { %3968 = sst [smem:[#allocation11_spill]] %s3437_s17  ;;  %p331_p8 = scmp.eq.s32.totalorder %s2710_s30, 1 }
   0xf   : > { %p3134_p10 = scmp.lt.s32.totalorder %s3315_s28, 2  ;;  %p3450_p11 = por %p325_p7, %p43_p0 }
  0x10   : > { %p3454_p12 = por %p331_p8, %p49_p3  ;;  %s387_s22 = sand.u32 1, %s3311_s27  }
  0x11   : > { %s3971_s20 = scalar_select %p3450_p11, 1, 0 }
  0x12   : > { %s3972_s21 = scalar_select %p3454_p12, 1, 0 }
  0x13   : > { %s2714_s23 = sshll.u32 %s3315_s28, 7  ;;  %s2713_s24 = sshll.u32 %s387_s22, 3 }
  0x14   : > { %s3463_s17 = scalar_lea.hbm %s3936_s0, %s2714_s23  ;;  %s391_s30 = scalar_lea.vmem [#allocation2], %s2713_s24 }
  0x15   : > { %s398_s14 = sshll.u32 %s391_s30, 4  ;;  %p3467_p13 = pnand %p3134_p10, %p3439_p5  ;;  %s3471_s14 = int_to_ptr.vmem [resolvable:$true] %s398_s14 }
  0x16   : > { %s388_s15 = scalar_lea.sflag [#allocation3], %s387_s22  ;;  %s3219_s23 = scalar_lea.hbm %s3463_s17, 128 }
  0x17   : > { %p3220_p2 = scmp.ne.s32.totalorder %s3463_s17, %s3219_s23  ;;  %p3221_p3 = pneg %p3467_p13 }
  0x18   : > { %s3224_s16 = scalar_lea.hbm %s3936_s0, 256  ;;  %p3225_p5 = scmp.lt.u32.totalorder %s3463_s17, %s3936_s0 }
  0x19   : > { %p3222_p4 = pnand %p3221_p3, %p3220_p2  ;;  %p3226_p8 = scmp.lt.u32.totalorder %s3224_s16, %s3219_s23 }
  0x1a   : > { %p3228_p9 = scmp.lt.u32.totalorder %s3219_s23, %s3463_s17 }
  0x1b   : > { %p3223_p7 = pneg %p3222_p4  ;;  %p3227_p10 = por %p3226_p8, %p3225_p5 }
  0x1d   : > { %p3229_p0 = por %p3228_p9, %p3227_p10 }
  0x1f   : > { %p3230_p1 = pnand %p3229_p0, %p3223_p7 }
  0x21   : > { %3233 = shalt.err (!%p3230_p1)
}
  0x22   : > { %s3234_s22 = scalar_lea.vmem %s3471_s14, 128  ;;  %s3317_s18 = smov [#allocation2]  }
  0x23   : > { %p3235_p2 = scmp.ne.s32.totalorder %s3471_s14, %s3234_s22  ;;  %s3239_s24 = sshll.u32 %s3317_s18, 4  ;;  %s3240_s24 = int_to_ptr.vmem [resolvable:$false] %s3239_s24 }
  0x24   : > { %s3241_s27 = scalar_lea.vmem %s3240_s24, 256  ;;  %p3242_p11 = scmp.lt.s32.totalorder %s3471_s14, %s3240_s24 }
  0x25   : > { %p3237_p4 = pnand %p3235_p2, %p3221_p3  ;;  %p3243_p5 = scmp.lt.s32.totalorder %s3241_s27, %s3234_s22 }
  0x27   : > { %p3238_p12 = pneg %p3237_p4  ;;  %p3244_p8 = por %p3243_p5, %p3242_p11 }
  0x29   : > { %p3245_p9 = pnand %p3244_p8, %p3238_p12 }
  0x2b   : > { %3248 = shalt.err (!%p3245_p9)
}
  0x2c   : > { %3129 = dma.hbm_to_vmem [thread:$0]  (!%p3467_p13), %s3463_s17, 128, %s3471_s14, %s388_s15  }
  0x2d   : > { %p3974_p0 = scmp.lt.s32.totalorder %s3315_s28, 3  ;;  %p3975_p1 = scmp.ge.s32.totalorder %s3315_s28, 1 }
  0x2f   : > { %p404_p3 = pnand %p3975_p1, %p3974_p0 }
  0x30   : > { %s3505_s23 = sand.u32 (!%p404_p3), 1, %s3307_s26  }
  0x31   : > { %407 = sbr.rel (%p404_p3) target bundleno = 5242 (0x147a), region = 72  ;;  %s3955_s16 = sshll.u32 (!%p404_p3), %s3505_s23, 3 }
  0x32   : > { %s410_s30 = scalar_lea.sflag (!%p404_p3), [#allocation3], %s3505_s23  ;;  %s413_s25 = scalar_lea.vmem (!%p404_p3), [#allocation2], %s3955_s16 }
  0x38   : > { %3294 = dma.done.wait (%p3443_p6), %s410_s30, 128  }
  0x39   : > { %3296 = vsyncadd (%p3443_p6), %s410_s30, 4294967168  ;;  %v3318_v0 = vmov 0.0|0.0   ;;  %vm3319_vm0 = vmmov 0   ;;  %v3320_v1 = vmov 0.0   ;;  %v457_v2 = vld [vmem:[%s3937_s1] sm:$0xff]  ;;  %v458_v3 = vld [vmem:[%s3937_s1 + $0x8] sm:$0xff] }
  0x3a   : > { %3062 = vmatprep.subr.bf16.mxu1 %v3318_v0  ;;  %2886 = vmatprep.mubr.msk.f32.mxu1 %vm3319_vm0, %v3320_v1  ;;  %v459_v4 = vld [vmem:[%s3937_s1 + $0x10] sm:$0xff]  ;;  %v3063_v5 = vpack.c.bf16 %v458_v3, %v457_v2  ;;  %v460_v6 = vld [vmem:[%s3937_s1 + $0x18] sm:$0xff]  ;;  %v3534_v8 = vld [vmem:[%s413_s25] sm:$0xff]  ;;  %vm468_vm1 = vcmask 261120   ;;  %s3963_s17 = smov 104   ;;  %s3964_s25 = smov 120  }
  0x3b   : > { %2899 = vmatprep.subr.mxu0 %v3320_v1  ;;  %2901 = vmatprep.mubr.msk.f32.mxu0 %vm3319_vm0, %v3320_v1  ;;  %v3066_v7 = vpack.c.bf16 %v460_v6, %v459_v4  ;;  %v2718_v9 = vld [vmem:[%s3938_s2] ss:$0 sm:$0xff]  ;;  %s3958_s15 = smov 96   ;;  %s3324_s19 = smov 112   ;;  %vm551_vm2 = vcmask 64512   ;;  %vm1215_vm3 = vcmask 130048  }
  0x3c   : > { %3064 = vmatpush3.bf16.msra.mxu1 %v3063_v5  ;;  %s3956_s22 = smov 64   ;;  %v1219_v6 = vld [vmem:[%s3939_s3] sm:$0xff]  ;;  %s3962_s18 = smov 8   ;;  %vm1217_vm4 = vcmask 195584   ;;  %vm1434_vm5 = vcmask 523264  }
  0x3d   : > { %3065 = vmatprep.subr.bf16.mxu1 %v3318_v0  ;;  %s3960_s24 = smov 24   ;;  %s3961_s16 = smov 16  }
  0x3e   : > { %s3978_s27 = smov 96   ;;  %p3984_p11 = scmp.ne.s32.totalorder %s3971_s20, 0 }
  0x40   : > { %3067 = vmatpush3.bf16.msra.mxu1 %v3066_v7  ;;  %v1220_v7 = vld [vmem:[%s3939_s3 + $0x8] sm:$0xff] }
  0x41   : > { %2889 = vmatprep.subr.mxu1 %v3320_v1 }
  0x43   : > { %2887 = vmatmul.mubr.msk.f32.vlgmr.msra.gmra.mrb[0].mxu1 %vm468_vm1, %v3534_v8 }
  0x44   : > { %2891 = vmatprep.mubr.msk.f32.mxu1 %vm3319_vm0, %v3320_v1 }
 0x116   : > { %v538_v10 = vpop.f32.mrb[0].mxu1 }
 0x117   : > { %v539_v11 = vadd.f32 %v2718_v9, %v538_v10  ;;  %v2888_v12 = vpop.f32.mrb[1].mxu1  ;;  %v3069_v9 = vpack.c.bf16 %v1220_v7, %v1219_v6  ;;  %v2738_v7 = vld [vmem:[%s3946_s10] ss:$0 sm:$0xff] }
 0x118   : > { %v1221_v12 = vld [vmem:[%s3939_s3 + $0x10] sm:$0xff] }
 0x119   : > { %547 = vrot.lane.b32.xlu1 %v539_v11, %s3963_s17  ;;  %543 = vrot.lane.b32.xlu0 %v539_v11, %s3964_s25  ;;  %s2627_s17 = scalar_lea.sflag [#allocation4], %s3505_s23 }
 0x11d   : > { %549 = vrot.lane.b32.xlu1 %v539_v11, %s3958_s15  ;;  %545 = vrot.lane.b32.xlu0 %v539_v11, %s3324_s19 }
 0x18b   : > { %v3548_v13 = vpop.permute.xlu1 %547  ;;  %v544_v14 = vpop.permute.xlu0 %543 }
 0x18c   : > { %626 = vrot.lane.b32.xlu0 %v544_v14, %s3958_s15 }
 0x18f   : > { %v550_v15 = vpop.permute.xlu1 %549  ;;  %v3551_v16 = vpop.permute.xlu0 %545 }
 0x190   : > { %2890 = vmatpush3.xpose.msk.msra.mxu1 %vm551_vm2, %v550_v15  ;;  %778 = vrot.lane.b32.xlu0 %v3548_v13, %s3958_s15 }
 0x191   : > { %702 = vrot.lane.b32.xlu1 %v3551_v16, %s3958_s15  ;;  %2894 = vmatprep.subr.mxu1 %v3320_v1 }
 0x193   : > { %2892 = vmatmul.mubr.msk.f32.vlgmr.msra.gmra.mrb[2].mxu1 %vm551_vm2, %v539_v11 }
 0x194   : > { %2896 = vmatprep.mubr.msk.f32.mxu1 %vm3319_vm0, %v3320_v1 }
 0x1fe   : > { %v627_v17 = vpop.permute.xlu0 %626 }
 0x1ff   : > { %2895 = vmatpush3.xpose.msk.msra.mxu1 %vm551_vm2, %v627_v17 }
 0x200   : > { %2904 = vmatprep.subr.mxu1 %v3320_v1 }
 0x202   : > { %2897 = vmatmul.mubr.msk.f32.vlgmr.msra.gmra.mrb[4].mxu1 %vm551_vm2, %v544_v14  ;;  %v779_v18 = vpop.permute.xlu0 %778 }
 0x203   : > { %v703_v19 = vpop.permute.xlu1 %702  ;;  %2905 = vmatpush3.xpose.msk.msra.mxu1 %vm551_vm2, %v779_v18  ;;  %2906 = vmatprep.mubr.msk.f32.mxu1 %vm3319_vm0, %v3320_v1 }
 0x204   : > { %2900 = vmatpush3.xpose.msk.msra.mxu0 %vm551_vm2, %v703_v19  ;;  %2914 = vmatprep.subr.mxu1 %v3320_v1 }
 0x205   : > { %2909 = vmatprep.subr.mxu0 %v3320_v1 }
 0x206   : > { %2907 = vmatmul.mubr.msk.f32.vlgmr.msra.gmra.mrb[6].mxu1 %vm551_vm2, %v3548_v13 }
 0x207   : > { %2902 = vmatmul.mubr.msk.f32.vlgmr.msra.gmra.mrb[0].mxu0 %vm551_vm2, %v3551_v16  ;;  %2916 = vmatprep.mubr.msk.f32.mxu1 %vm3319_vm0, %v3320_v1 }
 0x208   : > { %2911 = vmatprep.mubr.msk.f32.mxu0 %vm3319_vm0, %v3320_v1 }
 0x266   : > { %v622_v20 = vpop.f32.mrb[2].mxu1 }
 0x267   : > { %v2893_v21 = vpop.f32.mrb[3].mxu1  ;;  %v854_v22 = vsel %vm551_vm2, %v622_v20, -inf }
 0x268   : > { %855 = vmax.xlane.f32.xlu1 %v854_v22 }
 0x2d5   : > { %v698_v23 = vpop.f32.mrb[4].mxu1 }
 0x2d6   : > { %v2898_v24 = vpop.f32.mrb[5].mxu1  ;;  %v857_v25 = vsel %vm551_vm2, %v698_v23, -inf }
 0x2d7   : > { %858 = vmax.xlane.f32.xlu0 %v857_v25 }
 0x2d9   : > { %v850_v26 = vpop.f32.mrb[6].mxu1 }
 0x2da   : > { %v774_v27 = vpop.f32.mrb[0].mxu0  ;;  %v2908_v28 = vpop.f32.mrb[7].mxu1  ;;  %v863_v29 = vsel %vm551_vm2, %v850_v26, -inf }
 0x2db   : > { %v2903_v30 = vpop.f32.mrb[1].mxu0  ;;  %v860_v31 = vsel %vm551_vm2, %v774_v27, -inf  ;;  %864 = vmax.xlane.f32.xlu1 %v863_v29 }
 0x2dc   : > { %861 = vmax.xlane.f32.xlu0 %v860_v31 }
 0x2ec   : > { %974 = vrot.lane.b32.xlu1 %v544_v14, %s3956_s22 }
 0x2f2   : > { %898 = vrot.lane.b32.xlu0 %v539_v11, %s3956_s22 }
 0x2f5   : > { %v856_v32 = vpop.xlane.xlu1 %855 }
 0x2f6   : > { %v866_v33 = vsub.f32 %v622_v20, %v856_v32 }
 0x2f8   : > { %v870_v34 = vmul.f32 1.442695, %v866_v33 }
 0x2fa   : > { %3179 = vpow2.f32 %v870_v34 }
 0x304   : > { %v3180_v35 = vpop.eup %3179 }
 0x305   : > { %v878_v36 = vsel %vm551_vm2, %v3180_v35, 0.0 }
 0x311   : > { %879 = vadd.xlane.f32.xlu0 %v878_v36 }
 0x364   : > { %v859_v37 = vpop.xlane.xlu0 %858 }
 0x365   : > { %v867_v38 = vsub.f32 %v698_v23, %v859_v37 }
 0x367   : > { %v872_v39 = vmul.f32 1.442695, %v867_v38  ;;  %v1334_v38 = vld [vmem:[%s3943_s7] sm:$0xff] }
 0x368   : > { %v865_v40 = vpop.xlane.xlu1 %864 }
 0x369   : > { %3181 = vpow2.f32 %v872_v39  ;;  %v862_v41 = vpop.xlane.xlu0 %861  ;;  %v869_v42 = vsub.f32 %v850_v26, %v865_v40  ;;  %v1335_v39 = vld [vmem:[%s3943_s7 + $0x8] sm:$0xff] }
 0x36a   : > { %v868_v43 = vsub.f32 %v774_v27, %v862_v41  ;;  %v2732_v27 = vld [vmem:[%s3940_s4] ss:$0 sm:$0xff]  ;;  %v3075_v40 = vpack.c.bf16 %v1335_v39, %v1334_v38  ;;  %v1337_v41 = vld [vmem:[%s3943_s7 + $0x18] sm:$0xff] }
 0x36b   : > { %v876_v44 = vmul.f32 1.442695, %v869_v42 }
 0x36c   : > { %v874_v45 = vmul.f32 1.442695, %v868_v43  ;;  %v975_v46 = vpop.permute.xlu1 %974  ;;  %v1419_v43 = vld [vmem:[%s3945_s9] sm:$0xff] }
 0x36d   : > { %3183 = vpow2.f32 %v876_v44  ;;  %v899_v47 = vpop.permute.xlu0 %898  ;;  %2915 = vmatpush3.msra.mxu1 %v975_v46  ;;  %v1420_v44 = vld [vmem:[%s3945_s9 + $0x8] sm:$0xff] }
 0x36e   : > { %3185 = vpow2.f32 %v874_v45  ;;  %2910 = vmatpush3.msra.mxu0 %v899_v47  ;;  %2924 = vmatprep.subr.mxu1 %v3320_v1  ;;  %v1421_v45 = vld [vmem:[%s3945_s9 + $0x10] sm:$0xff]  ;;  %v3081_v46 = vpack.c.bf16 %v1420_v44, %v1419_v43  ;;  %v1422_v47 = vld [vmem:[%s3945_s9 + $0x18] sm:$0xff] }
 0x36f   : > { %2919 = vmatprep.subr.mxu0 %v3320_v1 }
 0x373   : > { %v3182_v48 = vpop.eup %3181 }
 0x374   : > { %v881_v49 = vsel %vm551_vm2, %v3182_v48, 0.0 }
 0x375   : > { %882 = vadd.xlane.f32.xlu1 %v881_v49  ;;  %v1423_v49 = vld [vmem:[%s3945_s9 + $0x20] sm:$0xff] }
 0x377   : > { %v3184_v50 = vpop.eup %3183 }
 0x378   : > { %v3186_v51 = vpop.eup %3185  ;;  %v887_v52 = vsel %vm551_vm2, %v3184_v50, 0.0 }
 0x379   : > { %v884_v53 = vsel %vm551_vm2, %v3186_v51, 0.0  ;;  %888 = vadd.xlane.f32.xlu1 %v887_v52 }
 0x37a   : > { %885 = vadd.xlane.f32.xlu0 %v884_v53 }
 0x38a   : > { %1050 = vrot.lane.b32.xlu1 %v3551_v16, %s3956_s22 }
 0x390   : > { %1126 = vrot.lane.b32.xlu0 %v3548_v13, %s3956_s22  ;;  %v1222_v13 = vld [vmem:[%s3939_s3 + $0x18] sm:$0xff]  ;;  %s3977_s22 = smov 104  }
 0x391   : > { %v3072_v14 = vpack.c.bf16 %v1222_v13, %v1221_v12 }
 0x39e   : > { %v880_v54 = vpop.xlane.xlu0 %879 }
 0x39f   : > { %3187 = vrcp.f32 %v880_v54 }
 0x3a9   : > { %v3188_v55 = vpop.eup %3187 }
 0x3aa   : > { %v894_v56 = vmul.f32 %v3188_v55, %v3180_v35 }
 0x3ac   : > { %2912 = vmatmul.mubr.msk.f32.vlgmr.msra.gmra.mrb[2].mxu0 %vm551_vm2, %v894_v56  ;;  %v2734_v56 = vld [vmem:[%s3941_s5] ss:$0 sm:$0xff] }
 0x3ad   : > { %2921 = vmatprep.mubr.msk.f32.mxu0 %vm3319_vm0, %v3320_v1 }
 0x402   : > { %v883_v57 = vpop.xlane.xlu1 %882 }
 0x403   : > { %3189 = vrcp.f32 %v883_v57 }
 0x406   : > { %v889_v58 = vpop.xlane.xlu1 %888 }
 0x407   : > { %v886_v59 = vpop.xlane.xlu0 %885  ;;  %3191 = vrcp.f32 %v889_v58  ;;  %v2735_v58 = vld [vmem:[%s3942_s6] ss:$0 sm:$0xff] }
 0x408   : > { %3193 = vrcp.f32 %v886_v59 }
 0x40a   : > { %v1051_v60 = vpop.permute.xlu1 %1050 }
 0x40b   : > { %2920 = vmatpush3.msra.mxu0 %v1051_v60  ;;  %v1127_v63 = vpop.permute.xlu0 %1126 }
 0x40c   : > { %3068 = vmatprep.subr.bf16.mxu0 %v3318_v0 }
 0x40d   : > { %v3190_v61 = vpop.eup %3189 }
 0x40e   : > { %v895_v62 = vmul.f32 %v3190_v61, %v3182_v48  ;;  %v3084_v48 = vpack.c.bf16 %v1422_v47, %v1421_v45  ;;  %v1425_v61 = vld [vmem:[%s3945_s9 + $0x30] sm:$0xff] }
 0x410   : > { %2917 = vmatmul.mubr.msk.f32.vlgmr.msra.gmra.mrb[8].mxu1 %vm551_vm2, %v895_v62  ;;  %v1426_v62 = vld [vmem:[%s3945_s9 + $0x38] sm:$0xff] }
 0x411   : > { %v3192_v2 = vpop.eup %3191  ;;  %2925 = vmatpush3.msra.mxu1 %v1127_v63  ;;  %2926 = vmatprep.mubr.msk.f32.mxu1 %vm3319_vm0, %v3320_v1  ;;  %v3090_v63 = vpack.c.bf16 %v1426_v62, %v1425_v61 }
 0x412   : > { %v3194_v3 = vpop.eup %3193  ;;  %v897_v4 = vmul.f32 %v3192_v2, %v3184_v50  ;;  %3074 = vmatprep.subr.bf16.mxu1 %v3318_v0  ;;  %v1424_v50 = vld [vmem:[%s3945_s9 + $0x28] sm:$0xff]  ;;  %v2736_v2 = vld [vmem:[%s3944_s8] ss:$0 sm:$0xff] }
 0x413   : > { %v896_v5 = vmul.f32 %v3194_v3, %v3186_v51  ;;  %v3087_v51 = vpack.c.bf16 %v1424_v50, %v1423_v49 }
 0x414   : > { %2927 = vmatmul.mubr.msk.f32.vlgmr.msra.gmra.mrb[10].mxu1 %vm551_vm2, %v897_v4 }
 0x415   : > { %2922 = vmatmul.mubr.msk.f32.vlgmr.msra.gmra.mrb[4].mxu0 %vm551_vm2, %v896_v5  ;;  %2948 = vmatprep.mubr.msk.f32.mxu1 %vm3319_vm0, %v3320_v1 }
 0x416   : > { %2937 = vmatprep.mubr.msk.f32.mxu0 %vm3319_vm0, %v3320_v1  ;;  %3070 = vmatpush3.bf16.msra.mxu0 %v3069_v9 }
 0x417   : > { %3071 = vmatprep.subr.bf16.mxu0 %v3318_v0  ;;  %3076 = vmatpush3.bf16.msra.mxu1 %v3075_v40 }
 0x418   : > { %3077 = vmatprep.subr.bf16.mxu1 %v3318_v0 }
 0x41a   : > { %3073 = vmatpush3.bf16.msra.mxu0 %v3072_v14 }
 0x41b   : > { %3080 = vmatprep.subr.bf16.mxu0 %v3318_v0 }
 0x47f   : > { %v970_v10 = vpop.f32.mrb[2].mxu0 }
 0x480   : > { %v2913_v11 = vpop.f32.mrb[3].mxu0 }
 0x4e3   : > { %v1046_v15 = vpop.f32.mrb[8].mxu1 }
 0x4e4   : > { %1203 = vrot.lane.b32.xlu1 %v1046_v15, %s3962_s18  ;;  %v2918_v16 = vpop.f32.mrb[9].mxu1  ;;  %s3983_s18 = sshll.u32 %s3505_s23, 3 }
 0x4e7   : > { %v1198_v17 = vpop.f32.mrb[10].mxu1 }
 0x4e8   : > { %v1122_v18 = vpop.f32.mrb[4].mxu0  ;;  %1211 = vrot.lane.b32.xlu1 %v1198_v17, %s3960_s24  ;;  %v2928_v19 = vpop.f32.mrb[11].mxu1  ;;  %s2795_s24 = sshll.u32 %s3421_s29, 7  ;;  %s3329_s29 = smov [#allocation5]  }
 0x4e9   : > { %1207 = vrot.lane.b32.xlu0 %v1122_v18, %s3961_s16  ;;  %v2923_v20 = vpop.f32.mrb[5].mxu0  ;;  %v2742_v19 = vld [vmem:[%s3937_s1 + $0x20] sm:$0xff]  ;;  %s3976_s16 = smov 120   ;;  %s3891_s30 = scalar_lea.hbm %s3949_s13, %s2795_s24 }
 0x4ea   : > { %v2743_v20 = vld [vmem:[%s3937_s1 + $0x28] sm:$0xff]  ;;  %s3253_s14 = sshll.u32 %s3329_s29, 4  ;;  %s3254_s14 = int_to_ptr.vmem [resolvable:$false] %s3253_s14 }
 0x4eb   : > { %s3255_s15 = scalar_lea.vmem %s3254_s14, 256 }
 0x556   : > { %v1204_v21 = vpop.permute.xlu1 %1203 }
 0x557   : > { %v1214_v23 = vsel %vm551_vm2, %v970_v10, %v1204_v21  ;;  %v3093_v21 = vpack.c.bf16 %v2743_v20, %v2742_v19 }
 0x55a   : > { %v1212_v22 = vpop.permute.xlu1 %1211 }
 0x55b   : > { %v1208_v24 = vpop.permute.xlu0 %1207 }
 0x55c   : > { %v1216_v25 = vsel %vm1215_vm3, %v1214_v23, %v1208_v24  ;;  %v2745_v23 = vld [vmem:[%s3937_s1 + $0x38] sm:$0xff] }
 0x55d   : > { %v1218_v26 = vsel %vm1217_vm4, %v1216_v25, %v1212_v22  ;;  %v2744_v22 = vld [vmem:[%s3937_s1 + $0x30] sm:$0xff] }
 0x55e   : > { %2938 = vmatmul.mubr.msk.f32.vlgmr.msra.gmra.mrb[6].mxu0 %vm468_vm1, %v1218_v26  ;;  %v3096_v24 = vpack.c.bf16 %v2745_v23, %v2744_v22 }
 0x55f   : > { %2967 = vmatprep.mubr.msk.f32.mxu0 %vm3319_vm0, %v3320_v1  ;;  %3082 = vmatpush3.bf16.msra.mxu0 %v3081_v46 }
 0x560   : > { %3083 = vmatprep.subr.bf16.mxu0 %v3318_v0 }
 0x563   : > { %3085 = vmatpush3.bf16.msra.mxu0 %v3084_v48 }
 0x564   : > { %3086 = vmatprep.subr.bf16.mxu0 %v3318_v0 }
 0x567   : > { %3088 = vmatpush3.bf16.msra.mxu0 %v3087_v51 }
 0x568   : > { %3089 = vmatprep.subr.bf16.mxu0 %v3318_v0 }
 0x56b   : > { %3091 = vmatpush3.bf16.msra.mxu0 %v3090_v63 }
 0x56c   : > { %2991 = vmatprep.subr.mxu0 %v3320_v1 }
 0x631   : > { %v1299_v28 = vpop.f32.mrb[6].mxu0 }
 0x632   : > { %v1300_v29 = vadd.f32 %v2732_v27, %v1299_v28  ;;  %v2939_v30 = vpop.f32.mrb[7].mxu0 }
 0x634   : > { %v1303_v31 = vadd.f32 %v1300_v29, %v3534_v8  ;;  %v1336_v8 = vld [vmem:[%s3943_s7 + $0x10] sm:$0xff]  ;;  %v2740_v29 = vld [vmem:[%s3947_s11] ss:$0 sm:$0xff] }
 0x635   : > { %v3078_v42 = vpack.c.bf16 %v1337_v41, %v1336_v8 }
 0x636   : > { %v1306_v32 = vsel %vm468_vm1, %v1303_v31, 0.0 }
 0x637   : > { %1307 = vadd.xlane.f32.xlu0 %v1306_v32  ;;  %3079 = vmatpush3.bf16.msra.mxu1 %v3078_v42 }
 0x638   : > { %3092 = vmatprep.subr.bf16.mxu1 %v3318_v0 }
 0x6c4   : > { %v1308_v33 = vpop.xlane.xlu0 %1307 }
 0x6c5   : > { %v1310_v34 = vmul.f32 0.03125, %v1308_v33 }
 0x6c7   : > { %v1311_v35 = vsub.f32 %v1303_v31, %v1310_v34  ;;  %v2741_v31 = vld [vmem:[%s3948_s12] ss:$0 sm:$0xff]  ;;  %v2747_v34 = vld [vmem:[%s3938_s2 + $0x1] ss:$0 sm:$0xff] }
 0x6c9   : > { %v1312_v36 = vmul.f32 %v1311_v35, %v1311_v35 }
 0x6cb   : > { %v1313_v37 = vsel %vm468_vm1, %v1312_v36, 0.0 }
 0x6cc   : > { %1314 = vadd.xlane.f32.xlu1 %v1313_v37 }
 0x759   : > { %v1315_v52 = vpop.xlane.xlu1 %1314 }
 0x75a   : > { %v1316_v53 = vmul.f32 0.03125, %v1315_v52 }
 0x75c   : > { %v1317_v54 = vadd.f32 1e-05, %v1316_v53 }
 0x75e   : > { %3195 = vrsqrt.f32 %v1317_v54 }
 0x768   : > { %v3196_v55 = vpop.eup %3195 }
 0x769   : > { %v1319_v57 = vmul.f32 %v3196_v55, %v1311_v35 }
 0x76b   : > { %v1326_v59 = vmul.f32 %v2734_v56, %v1319_v57 }
 0x76d   : > { %v1333_v60 = vadd.f32 %v2735_v58, %v1326_v59 }
 0x76f   : > { %2949 = vmatmul.mubr.msk.f32.vlgmr.msra.gmra.mrb[12].mxu1 %vm468_vm1, %v1333_v60 }
 0x770   : > { %2978 = vmatprep.mubr.msk.f32.mxu1 %vm3319_vm0, %v3320_v1  ;;  %3094 = vmatpush3.bf16.msra.mxu1 %v3093_v21 }
 0x771   : > { %3095 = vmatprep.subr.bf16.mxu1 %v3318_v0 }
 0x774   : > { %3097 = vmatpush3.bf16.msra.mxu1 %v3096_v24 }
 0x775   : > { %2981 = vmatprep.subr.mxu1 %v3320_v1 }
 0x842   : > { %v1414_v3 = vpop.f32.mrb[12].mxu1 }
 0x843   : > { %v1415_v4 = vadd.f32 %v2736_v2, %v1414_v3  ;;  %v2950_v5 = vpop.f32.mrb[13].mxu1 }
 0x845   : > { %v1418_v6 = vmax.f32 %v1415_v4, 0.0 }
 0x847   : > { %2968 = vmatmul.mubr.msk.f32.vlgmr.msra.gmra.mrb[8].mxu0 %vm1434_vm5, %v1418_v6 }
 0x848   : > { %2993 = vmatprep.mubr.msk.f32.mxu0 %vm3319_vm0, %v3320_v1 }
 0x91a   : > { %v1504_v9 = vpop.f32.mrb[8].mxu0 }
 0x91b   : > { %v1505_v10 = vadd.f32 %v2738_v7, %v1504_v9  ;;  %v2969_v11 = vpop.f32.mrb[9].mxu0 }
 0x91d   : > { %v1508_v12 = vadd.f32 %v1505_v10, %v1333_v60 }
 0x91f   : > { %v1511_v13 = vsel %vm468_vm1, %v1508_v12, 0.0 }
 0x920   : > { %1512 = vadd.xlane.f32.xlu0 %v1511_v13 }
 0x9ad   : > { %v1513_v14 = vpop.xlane.xlu0 %1512 }
 0x9ae   : > { %v1514_v15 = vmul.f32 0.03125, %v1513_v14 }
 0x9b0   : > { %v1515_v16 = vsub.f32 %v1508_v12, %v1514_v15 }
 0x9b2   : > { %v1516_v17 = vmul.f32 %v1515_v16, %v1515_v16 }
 0x9b4   : > { %v1517_v18 = vsel %vm468_vm1, %v1516_v17, 0.0 }
 0x9b5   : > { %1518 = vadd.xlane.f32.xlu0 %v1517_v18 }
 0xa42   : > { %v1519_v25 = vpop.xlane.xlu0 %1518 }
 0xa43   : > { %v1520_v26 = vmul.f32 0.03125, %v1519_v25 }
 0xa45   : > { %v1521_v27 = vadd.f32 1e-05, %v1520_v26 }
 0xa47   : > { %3197 = vrsqrt.f32 %v1521_v27 }
 0xa51   : > { %v3198_v28 = vpop.eup %3197 }
 0xa52   : > { %v1523_v30 = vmul.f32 %v3198_v28, %v1515_v16 }
 0xa54   : > { %v1530_v32 = vmul.f32 %v2740_v29, %v1523_v30 }
 0xa56   : > { %v3720_v33 = vadd.f32 %v2741_v31, %v1530_v32  ;;  %v2761_v31 = vld [vmem:[%s3939_s3 + $0x20] sm:$0xff]  ;;  %v2762_v32 = vld [vmem:[%s3939_s3 + $0x28] sm:$0xff] }
 0xa58   : > { %2979 = vmatmul.mubr.msk.f32.vlgmr.msra.gmra.mrb[14].mxu1 %vm468_vm1, %v3720_v33 }
 0xa59   : > { %2983 = vmatprep.mubr.msk.f32.mxu1 %vm3319_vm0, %v3320_v1 }
 0xb2b   : > { %v1620_v35 = vpop.f32.mrb[14].mxu1 }
 0xb2c   : > { %v1621_v36 = vadd.f32 %v2747_v34, %v1620_v35  ;;  %v2980_v37 = vpop.f32.mrb[15].mxu1  ;;  %v3099_v34 = vpack.c.bf16 %v2762_v32, %v2761_v31 }
 0xb2d   : > { %v2763_v37 = vld [vmem:[%s3939_s3 + $0x30] sm:$0xff] }
 0xb2e   : > { %1627 = vrot.lane.b32.xlu0 %v1621_v36, %s3324_s19  ;;  %1625 = vrot.lane.b32.xlu1 %v1621_v36, %s3976_s16  ;;  %s3979_s19 = smov 64   ;;  %s455_s16 = scalar_lea.vmem [#allocation5], %s3983_s18 }
 0xb32   : > { %1629 = vrot.lane.b32.xlu1 %v1621_v36, %s3977_s22  ;;  %s3980_s22 = smov 8  }
 0xb36   : > { %1631 = vrot.lane.b32.xlu1 %v1621_v36, %s3978_s27 }
 0xba0   : > { %v3733_v38 = vpop.permute.xlu0 %1627  ;;  %v1626_v39 = vpop.permute.xlu1 %1625 }
 0xba1   : > { %1783 = vrot.lane.b32.xlu1 %v3733_v38, %s3978_s27  ;;  %1707 = vrot.lane.b32.xlu0 %v1626_v39, %s3978_s27 }
 0xba4   : > { %v3738_v40 = vpop.permute.xlu1 %1629 }
 0xba5   : > { %1859 = vrot.lane.b32.xlu0 %v3738_v40, %s3978_s27  ;;  %s3981_s27 = smov 16  }
 0xba8   : > { %v1632_v8 = vpop.permute.xlu1 %1631 }
 0xba9   : > { %2982 = vmatpush3.xpose.msk.msra.mxu1 %vm551_vm2, %v1632_v8 }
 0xbaa   : > { %2986 = vmatprep.subr.mxu1 %v3320_v1 }
 0xbac   : > { %2984 = vmatmul.mubr.msk.f32.vlgmr.msra.gmra.mrb[16].mxu1 %vm551_vm2, %v1621_v36 }
 0xbad   : > { %2988 = vmatprep.mubr.msk.f32.mxu1 %vm3319_vm0, %v3320_v1 }
 0xc13   : > { %v1708_v41 = vpop.permute.xlu0 %1707  ;;  %v1784_v42 = vpop.permute.xlu1 %1783 }
 0xc14   : > { %2987 = vmatpush3.xpose.msk.msra.mxu1 %vm551_vm2, %v1708_v41  ;;  %2992 = vmatpush3.xpose.msk.msra.mxu0 %vm551_vm2, %v1784_v42 }
 0xc15   : > { %2996 = vmatprep.subr.mxu1 %v3320_v1  ;;  %3001 = vmatprep.subr.mxu0 %v3320_v1 }
 0xc17   : > { %v1860_v43 = vpop.permute.xlu0 %1859  ;;  %2989 = vmatmul.mubr.msk.f32.vlgmr.msra.gmra.mrb[18].mxu1 %vm551_vm2, %v1626_v39  ;;  %2994 = vmatmul.mubr.msk.f32.vlgmr.msra.gmra.mrb[10].mxu0 %vm551_vm2, %v3733_v38 }
 0xc18   : > { %2997 = vmatpush3.xpose.msk.msra.mxu1 %vm551_vm2, %v1860_v43  ;;  %2998 = vmatprep.mubr.msk.f32.mxu1 %vm3319_vm0, %v3320_v1 }
 0xc19   : > { %3006 = vmatprep.subr.mxu1 %v3320_v1  ;;  %3003 = vmatprep.mubr.msk.f32.mxu0 %vm3319_vm0, %v3320_v1 }
 0xc1b   : > { %2999 = vmatmul.mubr.msk.f32.vlgmr.msra.gmra.mrb[20].mxu1 %vm551_vm2, %v3738_v40 }
 0xc1c   : > { %3008 = vmatprep.mubr.msk.f32.mxu1 %vm3319_vm0, %v3320_v1 }
 0xc7f   : > { %v1703_v44 = vpop.f32.mrb[16].mxu1 }
 0xc80   : > { %v2985_v45 = vpop.f32.mrb[17].mxu1  ;;  %v1935_v46 = vsel %vm551_vm2, %v1703_v44, -inf }
 0xc81   : > { %1936 = vmax.xlane.f32.xlu1 %v1935_v46 }
 0xcea   : > { %v1779_v47 = vpop.f32.mrb[18].mxu1  ;;  %v1855_v48 = vpop.f32.mrb[10].mxu0 }
 0xceb   : > { %v2990_v49 = vpop.f32.mrb[19].mxu1  ;;  %v2995_v50 = vpop.f32.mrb[11].mxu0  ;;  %v1938_v51 = vsel %vm551_vm2, %v1779_v47, -inf  ;;  %v1941_v54 = vsel %vm551_vm2, %v1855_v48, -inf }
 0xcec   : > { %1939 = vmax.xlane.f32.xlu0 %v1938_v51  ;;  %v2766_v51 = vld [vmem:[%s3940_s4 + $0x1] ss:$0 sm:$0xff] }
 0xcee   : > { %v1931_v52 = vpop.f32.mrb[20].mxu1 }
 0xcef   : > { %v3000_v53 = vpop.f32.mrb[21].mxu1  ;;  %v1944_v55 = vsel %vm551_vm2, %v1931_v52, -inf }
 0xcf0   : > { %1942 = vmax.xlane.f32.xlu0 %v1941_v54  ;;  %1945 = vmax.xlane.f32.xlu1 %v1944_v55 }
 0xd01   : > { %2055 = vrot.lane.b32.xlu1 %v1626_v39, %s3979_s19 }
 0xd06   : > { %1979 = vrot.lane.b32.xlu0 %v1621_v36, %s3979_s19 }
 0xd0e   : > { %v1937_v56 = vpop.xlane.xlu1 %1936 }
 0xd0f   : > { %v1947_v57 = vsub.f32 %v1703_v44, %v1937_v56 }
 0xd11   : > { %v1951_v58 = vmul.f32 1.442695, %v1947_v57 }
 0xd13   : > { %3199 = vpow2.f32 %v1951_v58 }
 0xd1d   : > { %v3200_v59 = vpop.eup %3199 }
 0xd1e   : > { %v1959_v60 = vsel %vm551_vm2, %v3200_v59, 0.0 }
 0xd25   : > { %1960 = vadd.xlane.f32.xlu0 %v1959_v60 }
 0xd79   : > { %v1940_v61 = vpop.xlane.xlu0 %1939 }
 0xd7a   : > { %v1948_v62 = vsub.f32 %v1779_v47, %v1940_v61 }
 0xd7c   : > { %v1953_v63 = vmul.f32 1.442695, %v1948_v62  ;;  %v2773_v62 = vld [vmem:[%s3943_s7 + $0x28] sm:$0xff] }
 0xd7d   : > { %v1943_v2 = vpop.xlane.xlu0 %1942  ;;  %v1946_v3 = vpop.xlane.xlu1 %1945 }
 0xd7e   : > { %3201 = vpow2.f32 %v1953_v63  ;;  %v1949_v4 = vsub.f32 %v1855_v48, %v1943_v2  ;;  %v1950_v5 = vsub.f32 %v1931_v52, %v1946_v3  ;;  %v2775_v2 = vld [vmem:[%s3943_s7 + $0x38] sm:$0xff] }
 0xd80   : > { %v1955_v6 = vmul.f32 1.442695, %v1949_v4  ;;  %v1957_v7 = vmul.f32 1.442695, %v1950_v5  ;;  %v2779_v4 = vld [vmem:[%s3945_s9 + $0x40] sm:$0xff]  ;;  %v2780_v5 = vld [vmem:[%s3945_s9 + $0x48] sm:$0xff] }
 0xd81   : > { %v1980_v9 = vpop.permute.xlu0 %1979  ;;  %v2056_v10 = vpop.permute.xlu1 %2055 }
 0xd82   : > { %3203 = vpow2.f32 %v1955_v6  ;;  %3002 = vmatpush3.msra.mxu0 %v1980_v9  ;;  %3007 = vmatpush3.msra.mxu1 %v2056_v10  ;;  %v2781_v6 = vld [vmem:[%s3945_s9 + $0x50] sm:$0xff]  ;;  %v2782_v9 = vld [vmem:[%s3945_s9 + $0x58] sm:$0xff] }
 0xd83   : > { %3205 = vpow2.f32 %v1957_v7  ;;  %3011 = vmatprep.subr.mxu0 %v3320_v1  ;;  %3016 = vmatprep.subr.mxu1 %v3320_v1  ;;  %v3111_v7 = vpack.c.bf16 %v2780_v5, %v2779_v4  ;;  %v3114_v10 = vpack.c.bf16 %v2782_v9, %v2781_v6 }
 0xd88   : > { %v3202_v11 = vpop.eup %3201 }
 0xd89   : > { %v1962_v12 = vsel %vm551_vm2, %v3202_v11, 0.0 }
 0xd8a   : > { %1963 = vadd.xlane.f32.xlu1 %v1962_v12  ;;  %v2784_v12 = vld [vmem:[%s3945_s9 + $0x68] sm:$0xff] }
 0xd8c   : > { %v3204_v13 = vpop.eup %3203 }
 0xd8d   : > { %v3206_v14 = vpop.eup %3205  ;;  %v1965_v15 = vsel %vm551_vm2, %v3204_v13, 0.0 }
 0xd8e   : > { %1966 = vadd.xlane.f32.xlu0 %v1965_v15  ;;  %v1968_v16 = vsel %vm551_vm2, %v3206_v14, 0.0 }
 0xd8f   : > { %1969 = vadd.xlane.f32.xlu1 %v1968_v16 }
 0xda0   : > { %2131 = vrot.lane.b32.xlu1 %v3733_v38, %s3979_s19  ;;  %v2764_v38 = vld [vmem:[%s3939_s3 + $0x38] sm:$0xff] }
 0xda1   : > { %v3102_v39 = vpack.c.bf16 %v2764_v38, %v2763_v37 }
 0xda4   : > { %2207 = vrot.lane.b32.xlu0 %v3738_v40, %s3979_s19  ;;  %s3982_s19 = smov 24  }
 0xdb2   : > { %v1961_v17 = vpop.xlane.xlu0 %1960 }
 0xdb3   : > { %3207 = vrcp.f32 %v1961_v17 }
 0xdbd   : > { %v3208_v18 = vpop.eup %3207 }
 0xdbe   : > { %v1975_v19 = vmul.f32 %v3208_v18, %v3200_v59  ;;  %v2770_v18 = vld [vmem:[%s3941_s5 + $0x1] ss:$0 sm:$0xff] }
 0xdc0   : > { %3004 = vmatmul.mubr.msk.f32.vlgmr.msra.gmra.mrb[12].mxu0 %vm551_vm2, %v1975_v19 }
 0xdc1   : > { %3013 = vmatprep.mubr.msk.f32.mxu0 %vm3319_vm0, %v3320_v1 }
 0xe17   : > { %v1964_v20 = vpop.xlane.xlu1 %1963 }
 0xe18   : > { %3209 = vrcp.f32 %v1964_v20  ;;  %v2771_v20 = vld [vmem:[%s3942_s6 + $0x1] ss:$0 sm:$0xff] }
 0xe1b   : > { %v1967_v21 = vpop.xlane.xlu0 %1966 }
 0xe1c   : > { %3211 = vrcp.f32 %v1967_v21  ;;  %v1970_v22 = vpop.xlane.xlu1 %1969 }
 0xe1d   : > { %3213 = vrcp.f32 %v1970_v22 }
 0xe1f   : > { %v2208_v26 = vpop.permute.xlu0 %2207 }
 0xe20   : > { %v2132_v23 = vpop.permute.xlu1 %2131 }
 0xe21   : > { %3012 = vmatpush3.msra.mxu0 %v2132_v23  ;;  %v2786_v23 = vld [vmem:[%s3945_s9 + $0x78] sm:$0xff] }
 0xe22   : > { %v3210_v24 = vpop.eup %3209  ;;  %3098 = vmatprep.subr.bf16.mxu0 %v3318_v0 }
 0xe23   : > { %v1976_v25 = vmul.f32 %v3210_v24, %v3202_v11  ;;  %v2783_v11 = vld [vmem:[%s3945_s9 + $0x60] sm:$0xff] }
 0xe25   : > { %3009 = vmatmul.mubr.msk.f32.vlgmr.msra.gmra.mrb[22].mxu1 %vm551_vm2, %v1976_v25  ;;  %v2777_v25 = vld [vmem:[%s3944_s8 + $0x1] ss:$0 sm:$0xff] }
 0xe26   : > { %v3212_v27 = vpop.eup %3211  ;;  %3017 = vmatpush3.msra.mxu1 %v2208_v26  ;;  %3018 = vmatprep.mubr.msk.f32.mxu1 %vm3319_vm0, %v3320_v1 }
 0xe27   : > { %v3214_v28 = vpop.eup %3213  ;;  %v1977_v29 = vmul.f32 %v3212_v27, %v3204_v13  ;;  %3104 = vmatprep.subr.bf16.mxu1 %v3318_v0  ;;  %v3117_v13 = vpack.c.bf16 %v2784_v12, %v2783_v11 }
 0xe28   : > { %v1978_v30 = vmul.f32 %v3214_v28, %v3206_v14 }
 0xe29   : > { %3014 = vmatmul.mubr.msk.f32.vlgmr.msra.gmra.mrb[14].mxu0 %vm551_vm2, %v1977_v29 }
 0xe2a   : > { %3019 = vmatmul.mubr.msk.f32.vlgmr.msra.gmra.mrb[24].mxu1 %vm551_vm2, %v1978_v30  ;;  %3029 = vmatprep.mubr.msk.f32.mxu0 %vm3319_vm0, %v3320_v1  ;;  %v2788_v30 = vld [vmem:[%s3946_s10 + $0x1] ss:$0 sm:$0xff] }
 0xe2b   : > { %3040 = vmatprep.mubr.msk.f32.mxu1 %vm3319_vm0, %v3320_v1  ;;  %3100 = vmatpush3.bf16.msra.mxu0 %v3099_v34 }
 0xe2c   : > { %3101 = vmatprep.subr.bf16.mxu0 %v3318_v0 }
 0xe2f   : > { %3103 = vmatpush3.bf16.msra.mxu0 %v3102_v39 }
 0xe30   : > { %3110 = vmatprep.subr.bf16.mxu0 %v3318_v0 }
 0xe93   : > { %v2051_v35 = vpop.f32.mrb[12].mxu0 }
 0xe94   : > { %v3005_v36 = vpop.f32.mrb[13].mxu0 }
 0xef8   : > { %v2127_v40 = vpop.f32.mrb[22].mxu1 }
 0xef9   : > { %2284 = vrot.lane.b32.xlu1 %v2127_v40, %s3980_s22  ;;  %v3010_v8 = vpop.f32.mrb[23].mxu1  ;;  %s2640_s22 = sshll.u32 %s455_s16, 4  ;;  %s3893_s22 = int_to_ptr.vmem [resolvable:$true] %s2640_s22 }
 0xefa   : > { %s3249_s25 = scalar_lea.vmem %s3893_s22, 128  ;;  %p3256_p7 = scmp.lt.s32.totalorder %s3893_s22, %s3254_s14 }
 0xefb   : > { %p3250_p6 = scmp.ne.s32.totalorder %s3893_s22, %s3249_s25  ;;  %p3257_p10 = scmp.lt.s32.totalorder %s3255_s15, %s3249_s25 }
 0xefc   : > { %v2203_v41 = vpop.f32.mrb[14].mxu0 }
 0xefd   : > { %v2279_v42 = vpop.f32.mrb[24].mxu1  ;;  %2288 = vrot.lane.b32.xlu0 %v2203_v41, %s3981_s27  ;;  %v3015_v43 = vpop.f32.mrb[15].mxu0  ;;  %p3251_p12 = pnand %p3250_p6, %p3984_p11  ;;  %p3258_p2 = por %p3257_p10, %p3256_p7 }
 0xefe   : > { %2292 = vrot.lane.b32.xlu1 %v2279_v42, %s3982_s19  ;;  %v3020_v44 = vpop.f32.mrb[25].mxu1 }
 0xeff   : > { %p3252_p13 = pneg %p3251_p12 }
 0xf01   : > { %p3259_p4 = pnand %p3258_p2, %p3252_p13 }
 0xf6b   : > { %v2285_v45 = vpop.permute.xlu1 %2284 }
 0xf6c   : > { %v2295_v46 = vsel %vm551_vm2, %v2051_v35, %v2285_v45  ;;  %v2792_v45 = vld [vmem:[%s3947_s11 + $0x1] ss:$0 sm:$0xff] }
 0xf6f   : > { %v2289_v47 = vpop.permute.xlu0 %2288 }
 0xf70   : > { %v2296_v48 = vsel %vm1215_vm3, %v2295_v46, %v2289_v47  ;;  %v2293_v49 = vpop.permute.xlu1 %2292  ;;  %v2793_v47 = vld [vmem:[%s3948_s12 + $0x1] ss:$0 sm:$0xff] }
 0xf71   : > { %v2297_v50 = vsel %vm1217_vm4, %v2296_v48, %v2293_v49 }
 0xf72   : > { %3030 = vmatmul.mubr.msk.f32.vlgmr.msra.gmra.mrb[16].mxu0 %vm468_vm1, %v2297_v50 }
 0xf73   : > { %3059 = vmatprep.mubr.msk.f32.mxu0 %vm3319_vm0, %v3320_v1  ;;  %v2772_v1 = vld [vmem:[%s3943_s7 + $0x20] sm:$0xff]  ;;  %3112 = vmatpush3.bf16.msra.mxu0 %v3111_v7 }
 0xf74   : > { %v3105_v63 = vpack.c.bf16 %v2773_v62, %v2772_v1  ;;  %3113 = vmatprep.subr.bf16.mxu0 %v3318_v0 }
 0xf76   : > { %3106 = vmatpush3.bf16.msra.mxu1 %v3105_v63 }
 0xf77   : > { %3107 = vmatprep.subr.bf16.mxu1 %v3318_v0  ;;  %3115 = vmatpush3.bf16.msra.mxu0 %v3114_v10 }
 0xf78   : > { %3116 = vmatprep.subr.bf16.mxu0 %v3318_v0 }
 0xf7b   : > { %3118 = vmatpush3.bf16.msra.mxu0 %v3117_v13 }
 0xf7c   : > { %3119 = vmatprep.subr.bf16.mxu0 %v3318_v0  ;;  %v2785_v0 = vld [vmem:[%s3945_s9 + $0x70] sm:$0xff] }
 0xf7d   : > { %v3120_v24 = vpack.c.bf16 %v2786_v23, %v2785_v0 }
 0xf7f   : > { %3121 = vmatpush3.bf16.msra.mxu0 %v3120_v24 }
0x1045   : > { %v2380_v52 = vpop.f32.mrb[16].mxu0 }
0x1046   : > { %v2381_v53 = vadd.f32 %v2766_v51, %v2380_v52  ;;  %v3031_v54 = vpop.f32.mrb[17].mxu0 }
0x1048   : > { %v2384_v55 = vadd.f32 %v2381_v53, %v3720_v33  ;;  %v2774_v33 = vld [vmem:[%s3943_s7 + $0x30] sm:$0xff] }
0x1049   : > { %v3108_v3 = vpack.c.bf16 %v2775_v2, %v2774_v33 }
0x104a   : > { %v2389_v56 = vsel %vm468_vm1, %v2384_v55, 0.0 }
0x104b   : > { %2390 = vadd.xlane.f32.xlu0 %v2389_v56  ;;  %3109 = vmatpush3.bf16.msra.mxu1 %v3108_v3 }
0x10d8   : > { %v2391_v57 = vpop.xlane.xlu0 %2390 }
0x10d9   : > { %v2392_v58 = vmul.f32 0.03125, %v2391_v57 }
0x10db   : > { %v2393_v59 = vsub.f32 %v2384_v55, %v2392_v58 }
0x10dd   : > { %v2394_v60 = vmul.f32 %v2393_v59, %v2393_v59 }
0x10df   : > { %v2395_v61 = vsel %vm468_vm1, %v2394_v60, 0.0 }
0x10e0   : > { %2396 = vadd.xlane.f32.xlu1 %v2395_v61 }
0x116d   : > { %v2397_v14 = vpop.xlane.xlu1 %2396 }
0x116e   : > { %v2398_v15 = vmul.f32 0.03125, %v2397_v14 }
0x1170   : > { %v2399_v16 = vadd.f32 1e-05, %v2398_v15 }
0x1172   : > { %3215 = vrsqrt.f32 %v2399_v16 }
0x117c   : > { %v3216_v17 = vpop.eup %3215 }
0x117d   : > { %v2401_v19 = vmul.f32 %v3216_v17, %v2393_v59 }
0x117f   : > { %v2408_v21 = vmul.f32 %v2770_v18, %v2401_v19 }
0x1181   : > { %v2415_v22 = vadd.f32 %v2771_v20, %v2408_v21 }
0x1183   : > { %3041 = vmatmul.mubr.msk.f32.vlgmr.msra.gmra.mrb[26].mxu1 %vm468_vm1, %v2415_v22 }
0x1256   : > { %v2498_v26 = vpop.f32.mrb[26].mxu1 }
0x1257   : > { %v2499_v27 = vadd.f32 %v2777_v25, %v2498_v26  ;;  %v3042_v28 = vpop.f32.mrb[27].mxu1 }
0x1259   : > { %v2502_v29 = vmax.f32 %v2499_v27, 0.0 }
0x125b   : > { %3060 = vmatmul.mubr.msk.f32.vlgmr.msra.gmra.mrb[18].mxu0 %vm1434_vm5, %v2502_v29 }
0x132e   : > { %v2589_v31 = vpop.f32.mrb[18].mxu0 }
0x132f   : > { %v2590_v32 = vadd.f32 %v2788_v30, %v2589_v31  ;;  %v3061_v34 = vpop.f32.mrb[19].mxu0 }
0x1331   : > { %v2593_v35 = vadd.f32 %v2590_v32, %v2415_v22 }
0x1333   : > { %v2598_v36 = vsel %vm468_vm1, %v2593_v35, 0.0 }
0x1334   : > { %2599 = vadd.xlane.f32.xlu0 %v2598_v36 }
0x13c1   : > { %v2600_v37 = vpop.xlane.xlu0 %2599 }
0x13c2   : > { %v2601_v38 = vmul.f32 0.03125, %v2600_v37 }
0x13c4   : > { %v2602_v39 = vsub.f32 %v2593_v35, %v2601_v38 }
0x13c6   : > { %v2603_v40 = vmul.f32 %v2602_v39, %v2602_v39 }
0x13c8   : > { %v2604_v8 = vsel %vm468_vm1, %v2603_v40, 0.0 }
0x13c9   : > { %2605 = vadd.xlane.f32.xlu0 %v2604_v8 }
0x1456   : > { %v2606_v41 = vpop.xlane.xlu0 %2605 }
0x1457   : > { %v2607_v42 = vmul.f32 0.03125, %v2606_v41 }
0x1459   : > { %v2608_v43 = vadd.f32 1e-05, %v2607_v42 }
0x145b   : > { %3217 = vrsqrt.f32 %v2608_v43 }
0x1465   : > { %v3218_v44 = vpop.eup %3217 }
0x1466   : > { %v2610_v46 = vmul.f32 %v3218_v44, %v2602_v39 }
0x1468   : > { %v2617_v48 = vmul.f32 %v2792_v45, %v2610_v46 }
0x146a   : > { %v2624_v49 = vadd.f32 %v2793_v47, %v2617_v48 }
0x146c   : > { %2625 = vst.msk [vmem:[%s455_s16] sm:$0xff] %vm468_vm1, %v2624_v49 }
0x146d   : > { %3262 = shalt.err (!%p3259_p4)
}
0x146e   : > { %s3263_s23 = scalar_lea.hbm %s3891_s30, 128  ;;  %s3267_s16 = scalar_lea.hbm %s3949_s13, 256 }
0x146f   : > { %p3264_p5 = scmp.ne.s32.totalorder %s3891_s30, %s3263_s23  ;;  %p3268_p0 = scmp.lt.u32.totalorder %s3891_s30, %s3949_s13 }
0x1470   : > { %p3269_p1 = scmp.lt.u32.totalorder %s3267_s16, %s3263_s23  ;;  %p3271_p6 = scmp.lt.u32.totalorder %s3263_s23, %s3891_s30 }
0x1471   : > { %p3265_p8 = pnand %p3264_p5, %p3984_p11 }
0x1472   : > { %p3270_p3 = por %p3269_p1, %p3268_p0 }
0x1473   : > { %p3266_p9 = pneg %p3265_p8 }
0x1474   : > { %p3272_p12 = por %p3271_p6, %p3270_p3 }
0x1476   : > { %p3273_p13 = pnand %p3272_p12, %p3266_p9 }
0x1478   : > { %3276 = shalt.err (!%p3273_p13)
}
0x1479   : > { %3124 = dma.vmem_to_hbm [thread:$0]  (%p3984_p11), %s3893_s22, 128, %s3891_s30, %s2627_s17  }
0x147a PF: > { %s3985_s25 = sld [smem:[#allocation8_spill]]  ;;  %p3986_p7 = scmp.ne.s32.totalorder %s3972_s21, 0 }
0x147b   : > { %p3987_p10 = scmp.ge.s32.totalorder %s3315_s28, 2 }
0x147d   : > { %p3131_p2 = pnand %p3987_p10, %p3986_p7 }
0x1480   : > { %s2652_s29 = sand.u32 1, %s3985_s25  }
0x1481   : > { %s2653_s14 = scalar_lea.sflag [#allocation4], %s2652_s29 }
0x1482   : > { %3298 = dma.done.wait (!%p3131_p2), %s2653_s14, 128  }
0x1483   : > { %3300 = vsyncadd (!%p3131_p2), %s2653_s14, 4294967168  ;;  %s3988_s28 = sld [smem:[#allocation10_spill]]  ;;  %s3989_s15 = sld [smem:[#allocation9_spill]] }
0x1484   : > { %s3990_s27 = sld [smem:[#allocation11_spill]]  ;;  %s3991_s25 = smov %s3307_s26 }
0x1489   : > { %p26_p4 = scmp.ge.s32.totalorder %s3988_s28, 4   ;;  %s3992_s26 = smov %s3989_s15 }
0x148b   :  { %28 = sbr.rel (!%p26_p4) target bundleno = 5 (0x5), region = 129 }
0x1492   :  { %2658 = vsyncpa [#allocation3], 1 }
0x1493   :  { %2660 = vsyncpa [#allocation3 + $0x1], 1 }
0x1494   :  { %2661 = vsyncpa [#allocation4], 1 }
0x1495   :  { %2663 = vsyncpa [#allocation4 + $0x1], 1 }

</bundles_post_ra>
